<compile_context>
chip_gen: v6e
topology: v6e:2x2x1
jax: 0.10.0
libtpu: 0.0.40
codegen_flags: <defaults>
</compile_context>

<pallas_src>
import functools

import numpy as np
import jax
import jax.numpy as jnp
from jax.experimental import pallas as pl
from jax.experimental.pallas import tpu as pltpu


# ----------------- deterministic parameter construction (glue, numpy) --------

def _hz_to_mel_slaney(f):
    f = np.asarray(f, dtype=np.float64)
    f_sp = 200.0 / 3.0
    mels = f / f_sp
    min_log_hz = 1000.0
    min_log_mel = min_log_hz / f_sp
    logstep = np.log(6.4) / 27.0
    return np.where(
        f >= min_log_hz,
        min_log_mel + np.log(np.maximum(f, 1e-10) / min_log_hz) / logstep,
        mels,
    )


def _mel_to_hz_slaney(m):
    m = np.asarray(m, dtype=np.float64)
    f_sp = 200.0 / 3.0
    freqs = m * f_sp
    min_log_hz = 1000.0
    min_log_mel = min_log_hz / f_sp
    logstep = np.log(6.4) / 27.0
    return np.where(
        m >= min_log_mel,
        min_log_hz * np.exp(logstep * (m - min_log_mel)),
        freqs,
    )


def slaney_mel_filterbank(sample_rate, n_fft, n_mels, f_min, f_max):
    """torchaudio melscale_fbanks(mel_scale='slaney', norm=None) -> (n_freqs, n_mels)."""
    n_freqs = n_fft // 2 + 1
    if f_max is None:
        f_max = float(sample_rate) / 2.0
    all_freqs = np.linspace(0.0, sample_rate / 2.0, n_freqs)
    m_min = _hz_to_mel_slaney(f_min)
    m_max = _hz_to_mel_slaney(f_max)
    m_pts = np.linspace(m_min, m_max, n_mels + 2)
    f_pts = _mel_to_hz_slaney(m_pts)
    f_diff = f_pts[1:] - f_pts[:-1]
    slopes = f_pts[None, :] - all_freqs[:, None]       # (n_freqs, n_mels + 2)
    down = -slopes[:, :-2] / f_diff[:-1]
    up = slopes[:, 2:] / f_diff[1:]
    fb = np.maximum(0.0, np.minimum(down, up))         # (n_freqs, n_mels)
    return fb.astype(np.float32)


def _round_up(x, m):
    return ((x + m - 1) // m) * m


# ----------------------------- Pallas kernel ---------------------------------

def _mel_loss_kernel(ft_ref, fp_ref, dft_ref, mel_ref, acc_ref, *, fp_cols, eps):
    """Process one (tile_frames, n_fft) block of framed audio for both signals.

    acc_ref: (3, tile_frames, n_mels_pad) f32 output, VMEM-resident across the
    inner (arbitrary) grid axis:
        acc[0] += (S_t - S_p)^2   acc[1] += S_t^2
        acc[2] += |log2(S_t+eps) - log2(S_p+eps)|
    """
    i = pl.program_id(1)

    @pl.when(i == 0)
    def _():
        acc_ref[...] = jnp.zeros_like(acc_ref)

    dft = dft_ref[...]            # (n_fft, 2*FP) bf16, Hann window folded in
    mel = mel_ref[...]            # (FP, MELP) f32 slaney mel filterbank (padded)

    def melspec(frames):          # frames: (TN, n_fft) bf16
        # fused [win*cos | win*sin] DFT: one bf16 matmul, f32 accumulation
        z = jnp.dot(frames, dft, preferred_element_type=jnp.float32)   # (TN, 2FP)
        re = z[:, :fp_cols]
        im = z[:, fp_cols:]
        power = re * re + im * im                                      # (TN, FP)
        return jnp.dot(power, mel, preferred_element_type=jnp.float32)  # (TN, MELP)

    s_t = melspec(ft_ref[...])
    s_p = melspec(fp_ref[...])

    diff = s_t - s_p
    acc_ref[0] += diff * diff
    acc_ref[1] += s_t * s_t
    acc_ref[2] += jnp.abs(jnp.log2(s_t + eps) - jnp.log2(s_p + eps))


# ------------------------------- wrapper --------------------------------------

def mel_loss(x_pred, x_true, *, sample_rate, n_fft, hop_length, n_mels,
             f_min=0.0, f_max=None, eps=1e-7, tile_frames=256, max_chunks=2):
    # forward(): truncate to common (trailing) length
    min_len = min(int(x_true.shape[1]), int(x_pred.shape[1]))
    x_true = x_true[:, -min_len:]
    x_pred = x_pred[:, -min_len:]
    B, L = x_true.shape
    n_freqs = n_fft // 2 + 1
    n_frames = 1 + L // hop_length           # center=True STFT
    pad = n_fft // 2

    def frame(x):
        xp = jnp.pad(x.astype(jnp.float32), ((0, 0), (pad, pad)), mode="reflect")
        idx = (jnp.arange(n_frames)[:, None] * hop_length
               + jnp.arange(n_fft)[None, :])
        fr = xp[:, idx]                      # (B, n_frames, n_fft)
        # store the overlapped slab in bf16: halves HBM traffic and feeds the
        # MXU at native bf16 rate (f32 accumulation inside the kernel).
        return fr.reshape(B * n_frames, n_fft).astype(jnp.bfloat16)

    # TODO(synk): framing is still an XLA gather materializing the overlapped
    # slab in HBM (x n_fft/hop duplication); reading overlapping windows via an
    # element-offset index_map over the padded audio would remove that traffic.
    ft = frame(x_true)
    fp = frame(x_pred)

    n_rows = B * n_frames
    n_tiles = max(1, -(-n_rows // tile_frames))
    n_chunks = min(max_chunks, n_tiles)          # v7x: shard over 2 TCs
    tiles_per_chunk = -(-n_tiles // n_chunks)
    n_rows_pad = n_chunks * tiles_per_chunk * tile_frames
    if n_rows_pad != n_rows:
        extra = n_rows_pad - n_rows
        # zero frames contribute exactly 0 to every accumulated sum
        ft = jnp.pad(ft, ((0, extra), (0, 0)))
        fp = jnp.pad(fp, ((0, extra), (0, 0)))

    # lane-dense padded sizes
    FP = _round_up(n_freqs, 128)                 # padded n_freqs
    MELP = _round_up(n_mels, 128)                # padded n_mels

    # fused windowed-DFT matrix: columns = [win*cos | 0pad | win*sin | 0pad]
    n = np.arange(n_fft)
    k = np.arange(n_freqs)
    ang = 2.0 * np.pi * np.outer(n, k) / n_fft
    win = (0.5 - 0.5 * np.cos(2.0 * np.pi * n / n_fft))[:, None]   # periodic Hann
    dft_np = np.zeros((n_fft, 2 * FP), dtype=np.float32)
    dft_np[:, :n_freqs] = win * np.cos(ang)
    dft_np[:, FP:FP + n_freqs] = win * np.sin(ang)
    dft = jnp.asarray(dft_np, dtype=jnp.bfloat16)

    mel_np = np.zeros((FP, MELP), dtype=np.float32)
    mel_np[:n_freqs, :n_mels] = slaney_mel_filterbank(
        sample_rate, n_fft, n_mels, f_min, f_max)
    mel_fb = jnp.asarray(mel_np)

    kernel = functools.partial(_mel_loss_kernel, fp_cols=FP, eps=float(eps))

    acc = pl.pallas_call(
        kernel,
        out_shape=jax.ShapeDtypeStruct((n_chunks, 3, tile_frames, MELP),
                                       jnp.float32),
        grid_spec=pltpu.PrefetchScalarGridSpec(
            num_scalar_prefetch=0,
            grid=(n_chunks, tiles_per_chunk),
            in_specs=[
                pl.BlockSpec((tile_frames, n_fft),
                             lambda c, i: (c * tiles_per_chunk + i, 0)),
                pl.BlockSpec((tile_frames, n_fft),
                             lambda c, i: (c * tiles_per_chunk + i, 0)),
                pl.BlockSpec((n_fft, 2 * FP), lambda c, i: (0, 0)),
                pl.BlockSpec((FP, MELP), lambda c, i: (0, 0)),
            ],
            out_specs=pl.BlockSpec((None, 3, tile_frames, MELP),
                                   lambda c, i: (c, 0, 0, 0)),
        ),
        compiler_params=pltpu.CompilerParams(
            dimension_semantics=("parallel", "arbitrary"),
            vmem_limit_bytes=64 * 1024 * 1024),
    )(ft, fp, dft, mel_fb)

    # final tiny reductions + scalar glue in JAX (padded rows/cols are exact 0)
    d2 = jnp.sum(acc[:, 0])                      # ||S_t - S_p||_F^2
    t2 = jnp.sum(acc[:, 1])                      # ||S_t||_F^2
    l1 = jnp.sum(acc[:, 2])                      # sum |log2(S_t+eps)-log2(S_p+eps)|

    n_elems = B * n_mels * n_frames              # real mel-spectrogram elements
    converge_term = jnp.sqrt(d2) / (jnp.sqrt(t2) + eps)
    log_term = l1 / n_elems                      # F.l1_loss reduction='mean'
    return converge_term + log_term


if __name__ == "__main__":
    key = jax.random.PRNGKey(0)
    k1, k2 = jax.random.split(key)
    B, L = 2, 256
    x_true = jax.random.normal(k1, (B, L), dtype=jnp.float32)
    x_pred = jax.random.normal(k2, (B, L), dtype=jnp.float32)

    loss = mel_loss(x_pred, x_true,
                    sample_rate=4000, n_fft=64, hop_length=16, n_mels=8,
                    f_min=0.0, f_max=None, eps=1e-7)
    jax.block_until_ready(loss)
    print("KERNEL_OK")
</pallas_src>

<mosaic_0001>
module attributes {stable_mosaic.version = 11 : i64} {
  func.func @_mel_loss_kernel(%arg0: i32, %arg1: i32, %arg2: memref<256x64xbf16, #tpu.memory_space<vmem>>, %arg3: memref<256x64xbf16, #tpu.memory_space<vmem>>, %arg4: memref<64x256xbf16, #tpu.memory_space<vmem>>, %arg5: memref<128x128xf32, #tpu.memory_space<vmem>>, %arg6: memref<1x3x256x128xf32, #tpu.memory_space<vmem>>) attributes {dimension_semantics = [#tpu.dimension_semantics<parallel>, #tpu.dimension_semantics<arbitrary>], iteration_bounds = array<i64: 1, 1>, scalar_prefetch = 0 : i64, scratch_operands = 0 : i64, tpu.core_type = #tpu.core_type<tc>, window_params = [{transform_indices = @transform_0, window_bounds = array<i64: 256, 64>}, {transform_indices = @transform_1, window_bounds = array<i64: 256, 64>}, {pipeline_mode = #tpu.pipeline_mode<synchronous>, transform_indices = @transform_2, window_bounds = array<i64: 64, 256>}, {pipeline_mode = #tpu.pipeline_mode<synchronous>, transform_indices = @transform_3, window_bounds = array<i64: 128, 128>}, {transform_indices = @transform_4, window_bounds = array<i64: 1, 3, 256, 128>}]} {
    %c0_i32 = arith.constant 0 : i32
    %0 = arith.cmpi eq, %arg1, %c0_i32 : i32
    %1 = arith.extui %0 : i1 to i32
    %c0_i32_0 = arith.constant 0 : i32
    %2 = arith.cmpi ne, %1, %c0_i32_0 : i32
    scf.if %2 {
      %cst_37 = arith.constant 0.000000e+00 : f32
      %56 = vector.broadcast %cst_37 : f32 to vector<3x256x128xf32>
      %c0_38 = arith.constant 0 : index
      %c0_39 = arith.constant 0 : index
      %c0_40 = arith.constant 0 : index
      %c0_41 = arith.constant 0 : index
      %57 = vector.load %arg6[%c0_38, %c0_39, %c0_40, %c0_41] : memref<1x3x256x128xf32, #tpu.memory_space<vmem>>, vector<1x3x256x128xf32>
      %58 = vector.shape_cast %57 : vector<1x3x256x128xf32> to vector<3x256x128xf32>
      %59 = vector.shape_cast %56 : vector<3x256x128xf32> to vector<1x3x256x128xf32>
      tpu.vector_store %arg6[%c0_38, %c0_39, %c0_40, %c0_41], %59 {strides = array<i32>} : memref<1x3x256x128xf32, #tpu.memory_space<vmem>>, vector<1x3x256x128xf32>,
    } else {
    }
    %c0 = arith.constant 0 : index
    %c0_1 = arith.constant 0 : index
    %3 = vector.load %arg4[%c0, %c0_1] : memref<64x256xbf16, #tpu.memory_space<vmem>>, vector<64x256xbf16>
    %c0_2 = arith.constant 0 : index
    %c0_3 = arith.constant 0 : index
    %4 = vector.load %arg5[%c0_2, %c0_3] : memref<128x128xf32, #tpu.memory_space<vmem>>, vector<128x128xf32>
    %c0_4 = arith.constant 0 : index
    %c0_5 = arith.constant 0 : index
    %5 = vector.load %arg2[%c0_4, %c0_5] : memref<256x64xbf16, #tpu.memory_space<vmem>>, vector<256x64xbf16>
    %cst = arith.constant dense<0.000000e+00> : vector<256x256xf32>
    %6 = tpu.matmul %5, %3, %cst {dimension_numbers = #tpu.dot_dimension_numbers<[1], [0], [0], [1], [0, 0, 1, 1], [], []>} : vector<256x64xbf16>, vector<64x256xbf16>, vector<256x256xf32> -> vector<256x256xf32>
    %7 = vector.extract_strided_slice %6 {offsets = [0, 0], sizes = [256, 128], strides = [1, 1]} : vector<256x256xf32> to vector<256x128xf32>
    %8 = vector.extract_strided_slice %6 {offsets = [0, 128], sizes = [256, 128], strides = [1, 1]} : vector<256x256xf32> to vector<256x128xf32>
    %9 = arith.mulf %7, %7 : vector<256x128xf32>
    %10 = arith.mulf %8, %8 : vector<256x128xf32>
    %11 = arith.addf %9, %10 : vector<256x128xf32>
    %cst_6 = arith.constant dense<0.000000e+00> : vector<256x128xf32>
    %12 = tpu.matmul %11, %4, %cst_6 {dimension_numbers = #tpu.dot_dimension_numbers<[1], [0], [0], [1], [0, 0, 1, 1], [], []>} : vector<256x128xf32>, vector<128x128xf32>, vector<256x128xf32> -> vector<256x128xf32>
    %c0_7 = arith.constant 0 : index
    %c0_8 = arith.constant 0 : index
    %13 = vector.load %arg3[%c0_7, %c0_8] : memref<256x64xbf16, #tpu.memory_space<vmem>>, vector<256x64xbf16>
    %cst_9 = arith.constant dense<0.000000e+00> : vector<256x256xf32>
    %14 = tpu.matmul %13, %3, %cst_9 {dimension_numbers = #tpu.dot_dimension_numbers<[1], [0], [0], [1], [0, 0, 1, 1], [], []>} : vector<256x64xbf16>, vector<64x256xbf16>, vector<256x256xf32> -> vector<256x256xf32>
    %15 = vector.extract_strided_slice %14 {offsets = [0, 0], sizes = [256, 128], strides = [1, 1]} : vector<256x256xf32> to vector<256x128xf32>
    %16 = vector.extract_strided_slice %14 {offsets = [0, 128], sizes = [256, 128], strides = [1, 1]} : vector<256x256xf32> to vector<256x128xf32>
    %17 = arith.mulf %15, %15 : vector<256x128xf32>
    %18 = arith.mulf %16, %16 : vector<256x128xf32>
    %19 = arith.addf %17, %18 : vector<256x128xf32>
    %cst_10 = arith.constant dense<0.000000e+00> : vector<256x128xf32>
    %20 = tpu.matmul %19, %4, %cst_10 {dimension_numbers = #tpu.dot_dimension_numbers<[1], [0], [0], [1], [0, 0, 1, 1], [], []>} : vector<256x128xf32>, vector<128x128xf32>, vector<256x128xf32> -> vector<256x128xf32>
    %21 = arith.subf %12, %20 : vector<256x128xf32>
    %c0_11 = arith.constant 0 : index
    %c0_12 = arith.constant 0 : index
    %c0_13 = arith.constant 0 : index
    %c0_14 = arith.constant 0 : index
    %22 = vector.load %arg6[%c0_11, %c0_12, %c0_13, %c0_14] : memref<1x3x256x128xf32, #tpu.memory_space<vmem>>, vector<1x1x256x128xf32>
    %23 = vector.shape_cast %22 : vector<1x1x256x128xf32> to vector<256x128xf32>
    %24 = arith.mulf %21, %21 : vector<256x128xf32>
    %25 = arith.addf %23, %24 : vector<256x128xf32>
    %c0_15 = arith.constant 0 : index
    %c0_16 = arith.constant 0 : index
    %c0_17 = arith.constant 0 : index
    %c0_18 = arith.constant 0 : index
    %26 = vector.load %arg6[%c0_15, %c0_16, %c0_17, %c0_18] : memref<1x3x256x128xf32, #tpu.memory_space<vmem>>, vector<1x1x256x128xf32>
    %27 = vector.shape_cast %26 : vector<1x1x256x128xf32> to vector<256x128xf32>
    %28 = vector.shape_cast %25 : vector<256x128xf32> to vector<1x1x256x128xf32>
    tpu.vector_store %arg6[%c0_15, %c0_16, %c0_17, %c0_18], %28 {strides = array<i32>} : memref<1x3x256x128xf32, #tpu.memory_space<vmem>>, vector<1x1x256x128xf32>,
    %c0_19 = arith.constant 0 : index
    %c1 = arith.constant 1 : index
    %c0_20 = arith.constant 0 : index
    %c0_21 = arith.constant 0 : index
    %29 = vector.load %arg6[%c0_19, %c1, %c0_20, %c0_21] : memref<1x3x256x128xf32, #tpu.memory_space<vmem>>, vector<1x1x256x128xf32>
    %30 = vector.shape_cast %29 : vector<1x1x256x128xf32> to vector<256x128xf32>
    %31 = arith.mulf %12, %12 : vector<256x128xf32>
    %32 = arith.addf %30, %31 : vector<256x128xf32>
    %c0_22 = arith.constant 0 : index
    %c1_23 = arith.constant 1 : index
    %c0_24 = arith.constant 0 : index
    %c0_25 = arith.constant 0 : index
    %33 = vector.load %arg6[%c0_22, %c1_23, %c0_24, %c0_25] : memref<1x3x256x128xf32, #tpu.memory_space<vmem>>, vector<1x1x256x128xf32>
    %34 = vector.shape_cast %33 : vector<1x1x256x128xf32> to vector<256x128xf32>
    %35 = vector.shape_cast %32 : vector<256x128xf32> to vector<1x1x256x128xf32>
    tpu.vector_store %arg6[%c0_22, %c1_23, %c0_24, %c0_25], %35 {strides = array<i32>} : memref<1x3x256x128xf32, #tpu.memory_space<vmem>>, vector<1x1x256x128xf32>,
    %c0_26 = arith.constant 0 : index
    %c2 = arith.constant 2 : index
    %c0_27 = arith.constant 0 : index
    %c0_28 = arith.constant 0 : index
    %36 = vector.load %arg6[%c0_26, %c2, %c0_27, %c0_28] : memref<1x3x256x128xf32, #tpu.memory_space<vmem>>, vector<1x1x256x128xf32>
    %37 = vector.shape_cast %36 : vector<1x1x256x128xf32> to vector<256x128xf32>
    %cst_29 = arith.constant 1.000000e-07 : f32
    %38 = vector.broadcast %cst_29 : f32 to vector<256x128xf32>
    %39 = arith.addf %12, %38 : vector<256x128xf32>
    %40 = math.log %39 : vector<256x128xf32>
    %cst_30 = arith.constant 2.000000e+00 : f32
    %41 = math.log %cst_30 : f32
    %42 = vector.broadcast %41 : f32 to vector<256x128xf32>
    %43 = arith.divf %40, %42 : vector<256x128xf32>
    %cst_31 = arith.constant 1.000000e-07 : f32
    %44 = vector.broadcast %cst_31 : f32 to vector<256x128xf32>
    %45 = arith.addf %20, %44 : vector<256x128xf32>
    %46 = math.log %45 : vector<256x128xf32>
    %cst_32 = arith.constant 2.000000e+00 : f32
    %47 = math.log %cst_32 : f32
    %48 = vector.broadcast %47 : f32 to vector<256x128xf32>
    %49 = arith.divf %46, %48 : vector<256x128xf32>
    %50 = arith.subf %43, %49 : vector<256x128xf32>
    %51 = math.absf %50 : vector<256x128xf32>
    %52 = arith.addf %37, %51 : vector<256x128xf32>
    %c0_33 = arith.constant 0 : index
    %c2_34 = arith.constant 2 : index
    %c0_35 = arith.constant 0 : index
    %c0_36 = arith.constant 0 : index
    %53 = vector.load %arg6[%c0_33, %c2_34, %c0_35, %c0_36] : memref<1x3x256x128xf32, #tpu.memory_space<vmem>>, vector<1x1x256x128xf32>
    %54 = vector.shape_cast %53 : vector<1x1x256x128xf32> to vector<256x128xf32>
    %55 = vector.shape_cast %52 : vector<256x128xf32> to vector<1x1x256x128xf32>
    tpu.vector_store %arg6[%c0_33, %c2_34, %c0_35, %c0_36], %55 {strides = array<i32>} : memref<1x3x256x128xf32, #tpu.memory_space<vmem>>, vector<1x1x256x128xf32>,
    return
  }
  func.func @transform_0(%arg0: i32, %arg1: i32) -> (i32, i32) {
    %c1_i32 = arith.constant 1 : i32
    %0 = arith.muli %arg0, %c1_i32 : i32
    %1 = arith.addi %0, %arg1 : i32
    %c0_i32 = arith.constant 0 : i32
    %c0_i32_0 = arith.constant 0 : i32
    return %1, %c0_i32 : i32, i32
  }
  func.func @transform_1(%arg0: i32, %arg1: i32) -> (i32, i32) {
    %c1_i32 = arith.constant 1 : i32
    %0 = arith.muli %arg0, %c1_i32 : i32
    %1 = arith.addi %0, %arg1 : i32
    %c0_i32 = arith.constant 0 : i32
    %c0_i32_0 = arith.constant 0 : i32
    return %1, %c0_i32 : i32, i32
  }
  func.func @transform_2(%arg0: i32, %arg1: i32) -> (i32, i32) {
    %c0_i32 = arith.constant 0 : i32
    %c0_i32_0 = arith.constant 0 : i32
    %c0_i32_1 = arith.constant 0 : i32
    return %c0_i32, %c0_i32_0 : i32, i32
  }
  func.func @transform_3(%arg0: i32, %arg1: i32) -> (i32, i32) {
    %c0_i32 = arith.constant 0 : i32
    %c0_i32_0 = arith.constant 0 : i32
    %c0_i32_1 = arith.constant 0 : i32
    return %c0_i32, %c0_i32_0 : i32, i32
  }
  func.func @transform_4(%arg0: i32, %arg1: i32) -> (i32, i32, i32, i32) {
    %c0_i32 = arith.constant 0 : i32
    %c0_i32_0 = arith.constant 0 : i32
    %c0_i32_1 = arith.constant 0 : i32
    %c0_i32_2 = arith.constant 0 : i32
    return %arg0, %c0_i32, %c0_i32_0, %c0_i32_1 : i32, i32, i32, i32
  }
}

</mosaic_0001>

<bundles_post_ra>
// kernel: tpu_custom_call.1
= control target key start
LH: loop header
LB: loop body
LE: loop exit
PB: predicated region body
PF: predicated region fallthrough
CT: control target
= control target key end

     0   :  { %v2838_v2 = vmov 0   ;;  %vm339_vm0 = vcmask 523264   ;;  %s3326_s0 = inlined_call_operand.vmem [shape: bf16[256,64], index: 0, kind: input, shape index: {}]   ;;  %s3327_s1 = inlined_call_operand.vmem [shape: bf16[256,64], index: 1, kind: input, shape index: {}]   ;;  %s3328_s2 = inlined_call_operand.vmem [shape: bf16[64,256], index: 2, kind: input, shape index: {}]   ;;  %s3329_s3 = inlined_call_operand.vmem [shape: f32[128,128], index: 3, kind: input, shape index: {}]   ;;  %s3330_s4 = inlined_call_operand.hbm [shape: f32[1,3,256,128], index: 4, kind: output, shape index: {}]  }
   0x1   :  { %v2870_v0 = vld [vmem:[%s3328_s2 + $0x34] ss:$8 sps:$4 sm:$0xff]   ;;  %v2875_v1 = vld [vmem:[%s3328_s2 + $0x30] ss:$8 sps:$4 sm:$0xff]   ;;  %420 = vmatprep.mubr.bf16.mxu0 %v2838_v2  ;;  %v2882_v3 = vld [vmem:[%s3328_s2 + $0x24] ss:$8 sps:$4 sm:$0xff]  }
   0x2   :  { %396 = vmatprep.subr.bf16.mxu0 %v2870_v0  ;;  %v2888_v4 = vld [vmem:[%s3328_s2 + $0x20] ss:$8 sps:$4 sm:$0xff]   ;;  %v2894_v5 = vld [vmem:[%s3328_s2 + $0x14] ss:$8 sps:$4 sm:$0xff]   ;;  %v2900_v6 = vld [vmem:[%s3328_s2 + $0x10] ss:$8 sps:$4 sm:$0xff]  }
   0x3   :  { %397 = vmatpush1.bf16.msra.mxu0 %v2875_v1  ;;  %v2906_v7 = vld [vmem:[%s3328_s2 + $0x4] ss:$8 sps:$4 sm:$0xff]   ;;  %v2912_v8 = vld [vmem:[%s3328_s2] ss:$8 sps:$4 sm:$0xff]   ;;  %v186_v10 = vld [vmem:[%s3329_s3 + $0x78] sm:$0xff] }
   0x4   :  { %398 = vmatprep.subr.bf16.mxu0 %v2882_v3  ;;  %v2656_v9 = vld [vmem:[%s3326_s0] sm:$0xff]   ;;  %v185_v11 = vld [vmem:[%s3329_s3 + $0x70] sm:$0xff]  ;;  %v2657_v12 = vld [vmem:[%s3326_s0 + $0x8] sm:$0xff]   ;;  %2479 = vmatprep.subr.mxu1 %v186_v10 }
   0x5   :  { %2480 = vmatpush3.msra.mxu1 %v186_v10  ;;  %v184_v13 = vld [vmem:[%s3329_s3 + $0x68] sm:$0xff]  ;;  %v183_v14 = vld [vmem:[%s3329_s3 + $0x60] sm:$0xff]  ;;  %v182_v15 = vld [vmem:[%s3329_s3 + $0x58] sm:$0xff] }
   0x6   :  { %2481 = vmatprep.subr.mxu1 %v185_v11  ;;  %v181_v16 = vld [vmem:[%s3329_s3 + $0x50] sm:$0xff]  ;;  %v180_v18 = vld [vmem:[%s3329_s3 + $0x48] sm:$0xff]  ;;  %v179_v19 = vld [vmem:[%s3329_s3 + $0x40] sm:$0xff] }
   0x7   :  { %399 = vmatpush1.bf16.msra.mxu0 %v2888_v4  ;;  %2482 = vmatpush3.msra.mxu1 %v185_v11  ;;  %v2658_v17 = vld [vmem:[%s3326_s0 + $0x10] sm:$0xff]   ;;  %v178_v20 = vld [vmem:[%s3329_s3 + $0x38] sm:$0xff] }
   0x8   :  { %400 = vmatprep.subr.bf16.mxu0 %v2894_v5  ;;  %2483 = vmatprep.subr.mxu1 %v184_v13 }
   0x9   :  { %2484 = vmatpush3.msra.mxu1 %v184_v13 }
   0xa   :  { %2485 = vmatprep.subr.mxu1 %v183_v14 }
   0xb   :  { %401 = vmatpush1.bf16.msra.mxu0 %v2900_v6  ;;  %2486 = vmatpush3.msra.mxu1 %v183_v14 }
   0xc   :  { %402 = vmatprep.subr.bf16.mxu0 %v2906_v7  ;;  %2487 = vmatprep.subr.mxu1 %v182_v15 }
   0xd   :  { %2488 = vmatpush3.msra.mxu1 %v182_v15 }
   0xe   :  { %2489 = vmatprep.subr.mxu1 %v181_v16 }
   0xf   :  { %403 = vmatpush1.bf16.msra.mxu0 %v2912_v8  ;;  %2490 = vmatpush3.msra.mxu1 %v181_v16 }
  0x10   :  { %2559 = vmatprep.subr.mxu0 %v186_v10  ;;  %2491 = vmatprep.subr.mxu1 %v180_v18 }
  0x11   :  { %2492 = vmatpush3.msra.mxu1 %v180_v18 }
  0x12   :  { %2335 = vmatmul.mubr.msk.bf16.vlgmr.msra.gmra.mxu0 %vm339_vm0, %v2656_v9 }
  0x13   :  { %430 = vmatprep.mubr.bf16.mxu0 %v2838_v2  ;;  %2560 = vmatpush3.msra.mxu0 %v186_v10 }
  0x14   :  { %2561 = vmatprep.subr.mxu0 %v185_v11 }
  0x15   :  { %2562 = vmatpush3.msra.mxu0 %v185_v11 }
  0x16   :  { %2563 = vmatprep.subr.mxu0 %v184_v13 }
  0x17   :  { %2564 = vmatpush3.msra.mxu0 %v184_v13 }
  0x18   :  { %2565 = vmatprep.subr.mxu0 %v183_v14 }
  0x19   :  { %2566 = vmatpush3.msra.mxu0 %v183_v14 }
  0x1a   :  { %2336 = vmatmul.mubr.msk.bf16.gmra.mxu0 %vm339_vm0, %v2657_v12  ;;  %2567 = vmatprep.subr.mxu0 %v182_v15 }
  0x1b   :  { %440 = vmatprep.mubr.bf16.mxu0 %v2838_v2  ;;  %2568 = vmatpush3.msra.mxu0 %v182_v15 }
  0x22   :  { %2337 = vmatmul.mubr.msk.bf16.gmra.mxu0 %vm339_vm0, %v2658_v17 }
  0x23   :  { %450 = vmatprep.mubr.bf16.mxu0 %v2838_v2 }
  0x24   :  { %9 = vsyncpa [#allocation3], 0  ;;  %2493 = vmatprep.subr.mxu1 %v179_v19  ;;  %2569 = vmatprep.subr.mxu0 %v181_v16  ;;  %v177_v21 = vld [vmem:[%s3329_s3 + $0x30] sm:$0xff]  ;;  %v2659_v22 = vld [vmem:[%s3326_s0 + $0x18] sm:$0xff]  }
  0x25   :  { %2494 = vmatpush3.msra.mxu1 %v179_v19  ;;  %2570 = vmatpush3.msra.mxu0 %v181_v16  ;;  %v176_v23 = vld [vmem:[%s3329_s3 + $0x28] sm:$0xff]  ;;  %v2660_v24 = vld [vmem:[%s3326_s0 + $0x20] sm:$0xff]   ;;  %v2662_v26 = vld [vmem:[%s3326_s0 + $0x30] sm:$0xff]  }
  0x26   :  { %2495 = vmatprep.subr.mxu1 %v178_v20  ;;  %2571 = vmatprep.subr.mxu0 %v180_v18  ;;  %v2661_v25 = vld [vmem:[%s3326_s0 + $0x28] sm:$0xff]   ;;  %v2663_v27 = vld [vmem:[%s3326_s0 + $0x38] sm:$0xff]   ;;  %v2664_v28 = vld [vmem:[%s3326_s0 + $0x40] sm:$0xff]  }
  0x27   :  { %2496 = vmatpush3.msra.mxu1 %v178_v20  ;;  %2572 = vmatpush3.msra.mxu0 %v180_v18  ;;  %v175_v29 = vld [vmem:[%s3329_s3 + $0x20] sm:$0xff]  ;;  %v174_v30 = vld [vmem:[%s3329_s3 + $0x18] sm:$0xff]  ;;  %v2665_v31 = vld [vmem:[%s3326_s0 + $0x48] sm:$0xff]  }
  0x28   :  { %2497 = vmatprep.subr.mxu1 %v177_v21  ;;  %2573 = vmatprep.subr.mxu0 %v179_v19  ;;  %v173_v32 = vld [vmem:[%s3329_s3 + $0x10] sm:$0xff]  ;;  %v172_v33 = vld [vmem:[%s3329_s3 + $0x8] sm:$0xff]  ;;  %v171_v34 = vld [vmem:[%s3329_s3] sm:$0xff] }
  0x29   :  { %2498 = vmatpush3.msra.mxu1 %v177_v21  ;;  %2574 = vmatpush3.msra.mxu0 %v179_v19  ;;  %v2666_v35 = vld [vmem:[%s3326_s0 + $0x50] sm:$0xff]   ;;  %v2667_v36 = vld [vmem:[%s3326_s0 + $0x58] sm:$0xff]   ;;  %v2668_v37 = vld [vmem:[%s3326_s0 + $0x60] sm:$0xff]  }
  0x2a   :  { %2338 = vmatmul.mubr.msk.bf16.gmra.mxu0 %vm339_vm0, %v2659_v22  ;;  %2499 = vmatprep.subr.mxu1 %v176_v23  ;;  %v2669_v38 = vld [vmem:[%s3326_s0 + $0x68] sm:$0xff]   ;;  %v2670_v39 = vld [vmem:[%s3326_s0 + $0x70] sm:$0xff]   ;;  %v2671_v40 = vld [vmem:[%s3326_s0 + $0x78] sm:$0xff]  }
  0x2b   :  { %460 = vmatprep.mubr.bf16.mxu0 %v2838_v2  ;;  %2500 = vmatpush3.msra.mxu1 %v176_v23 }
  0x2c   :  { %2575 = vmatprep.subr.mxu0 %v178_v20  ;;  %2501 = vmatprep.subr.mxu1 %v175_v29 }
  0x2d   :  { %2576 = vmatpush3.msra.mxu0 %v178_v20  ;;  %2502 = vmatpush3.msra.mxu1 %v175_v29 }
  0x2e   :  { %2577 = vmatprep.subr.mxu0 %v177_v21  ;;  %2503 = vmatprep.subr.mxu1 %v174_v30 }
  0x2f   :  { %2578 = vmatpush3.msra.mxu0 %v177_v21  ;;  %2504 = vmatpush3.msra.mxu1 %v174_v30 }
  0x30   :  { %2579 = vmatprep.subr.mxu0 %v176_v23  ;;  %2505 = vmatprep.subr.mxu1 %v173_v32 }
  0x31   :  { %2580 = vmatpush3.msra.mxu0 %v176_v23  ;;  %2506 = vmatpush3.msra.mxu1 %v173_v32 }
  0x32   :  { %2339 = vmatmul.mubr.msk.bf16.gmra.mxu0 %vm339_vm0, %v2660_v24  ;;  %2581 = vmatprep.subr.mxu0 %v175_v29 }
  0x33   :  { %470 = vmatprep.mubr.bf16.mxu0 %v2838_v2  ;;  %2582 = vmatpush3.msra.mxu0 %v175_v29 }
  0x34   :  { %2583 = vmatprep.subr.mxu0 %v174_v30  ;;  %2507 = vmatprep.subr.mxu1 %v172_v33 }
  0x35   :  { %2584 = vmatpush3.msra.mxu0 %v174_v30  ;;  %2508 = vmatpush3.msra.mxu1 %v172_v33 }
  0x36   :  { %2585 = vmatprep.subr.mxu0 %v173_v32  ;;  %2509 = vmatprep.subr.mxu1 %v171_v34 }
  0x37   :  { %2586 = vmatpush3.msra.mxu0 %v173_v32  ;;  %2510 = vmatpush3.msra.mxu1 %v171_v34 }
  0x38   :  { %2587 = vmatprep.subr.mxu0 %v172_v33  ;;  %1070 = vmatprep.subr.bf16.mxu1 %v2870_v0 }
  0x39   :  { %2588 = vmatpush3.msra.mxu0 %v172_v33 }
  0x3a   :  { %2340 = vmatmul.mubr.msk.bf16.gmra.mxu0 %vm339_vm0, %v2661_v25  ;;  %2589 = vmatprep.subr.mxu0 %v171_v34 }
  0x3b   :  { %480 = vmatprep.mubr.bf16.mxu0 %v2838_v2  ;;  %2590 = vmatpush3.msra.mxu0 %v171_v34 }
  0x42   :  { %2341 = vmatmul.mubr.msk.bf16.gmra.mxu0 %vm339_vm0, %v2662_v26 }
  0x43   :  { %490 = vmatprep.mubr.bf16.mxu0 %v2838_v2 }
  0x4a   :  { %2342 = vmatmul.mubr.msk.bf16.gmra.mxu0 %vm339_vm0, %v2663_v27 }
  0x4b   :  { %500 = vmatprep.mubr.bf16.mxu0 %v2838_v2 }
  0x52   :  { %2343 = vmatmul.mubr.msk.bf16.gmra.mxu0 %vm339_vm0, %v2664_v28 }
  0x53   :  { %510 = vmatprep.mubr.bf16.mxu0 %v2838_v2 }
  0x5a   :  { %2344 = vmatmul.mubr.msk.bf16.gmra.mxu0 %vm339_vm0, %v2665_v31 }
  0x5b   :  { %520 = vmatprep.mubr.bf16.mxu0 %v2838_v2 }
  0x62   :  { %2345 = vmatmul.mubr.msk.bf16.gmra.mxu0 %vm339_vm0, %v2666_v35 }
  0x63   :  { %530 = vmatprep.mubr.bf16.mxu0 %v2838_v2 }
  0x6a   :  { %2346 = vmatmul.mubr.msk.bf16.gmra.mxu0 %vm339_vm0, %v2667_v36 }
  0x6b   :  { %540 = vmatprep.mubr.bf16.mxu0 %v2838_v2 }
  0x72   :  { %2347 = vmatmul.mubr.msk.bf16.gmra.mxu0 %vm339_vm0, %v2668_v37 }
  0x73   :  { %550 = vmatprep.mubr.bf16.mxu0 %v2838_v2 }
  0x7a   :  { %2348 = vmatmul.mubr.msk.bf16.gmra.mxu0 %vm339_vm0, %v2669_v38 }
  0x7b   :  { %560 = vmatprep.mubr.bf16.mxu0 %v2838_v2 }
  0x82   :  { %2349 = vmatmul.mubr.msk.bf16.gmra.mxu0 %vm339_vm0, %v2670_v39 }
  0x83   :  { %570 = vmatprep.mubr.bf16.mxu0 %v2838_v2 }
  0x8a   :  { %2350 = vmatmul.mubr.msk.bf16.gmra.mxu0 %vm339_vm0, %v2671_v40 }
  0xd2   :  { %v422_v41 = vpop.f32.mrf.mxu0 }
  0xd3   :  { %v581_v43 = vmul.f32 %v422_v41, %v422_v41 }
  0xd4   :  { %v424_v42 = vpop.f32.mrf.mxu0 }
  0xd5   :  { %v613_v44 = vmul.f32 %v424_v42, %v424_v42 }
  0xd6   :  { %v426_v45 = vpop.f32.mrf.mxu0 }
  0xd7   :  { %v645_v46 = vadd.f32 %v613_v44, %v581_v43  ;;  %v582_v48 = vmul.f32 %v426_v45, %v426_v45 }
  0xd8   :  { %v428_v47 = vpop.f32.mrf.mxu0 }
  0xd9   :  { %v614_v49 = vmul.f32 %v428_v47, %v428_v47  ;;  %2511 = vmatprep.mubr.f32.mxu1 %v645_v46 }
  0xda   :  { %v432_v50 = vpop.f32.mrf.mxu0 }
  0xdb   :  { %v646_v51 = vadd.f32 %v614_v49, %v582_v48  ;;  %v583_v53 = vmul.f32 %v432_v50, %v432_v50 }
  0xdc   :  { %v434_v52 = vpop.f32.mrf.mxu0 }
  0xdd   :  { %v615_v54 = vmul.f32 %v434_v52, %v434_v52  ;;  %2512 = vmatmul.mubr.f32.vlgmr.msra.gmra.mxu1 %v646_v51 }
  0xde   :  { %v436_v55 = vpop.f32.mrf.mxu0  ;;  %1071 = vmatpush1.bf16.msra.mxu1 %v2875_v1 }
  0xdf   :  { %v647_v56 = vadd.f32 %v615_v54, %v583_v53  ;;  %1072 = vmatprep.subr.bf16.mxu1 %v2882_v3  ;;  %v584_v58 = vmul.f32 %v436_v55, %v436_v55 }
  0xe0   :  { %v438_v57 = vpop.f32.mrf.mxu0 }
  0xe1   :  { %v616_v59 = vmul.f32 %v438_v57, %v438_v57  ;;  %2514 = vmatprep.mubr.f32.mxu1 %v647_v56 }
  0xe2   :  { %v442_v60 = vpop.f32.mrf.mxu0  ;;  %1073 = vmatpush1.bf16.msra.mxu1 %v2888_v4 }
  0xe3   :  { %v648_v61 = vadd.f32 %v616_v59, %v584_v58  ;;  %1074 = vmatprep.subr.bf16.mxu1 %v2894_v5  ;;  %v585_v63 = vmul.f32 %v442_v60, %v442_v60 }
  0xe4   :  { %v444_v62 = vpop.f32.mrf.mxu0 }
  0xe5   :  { %v617_v0 = vmul.f32 %v444_v62, %v444_v62  ;;  %2515 = vmatmul.mubr.f32.gmra.mxu1 %v648_v61 }
  0xe6   :  { %v446_v9 = vpop.f32.mrf.mxu0  ;;  %1075 = vmatpush1.bf16.msra.mxu1 %v2900_v6 }
  0xe7   :  { %v649_v1 = vadd.f32 %v617_v0, %v585_v63  ;;  %1076 = vmatprep.subr.bf16.mxu1 %v2906_v7  ;;  %v586_v10 = vmul.f32 %v446_v9, %v446_v9 }
  0xe8   :  { %v448_v3 = vpop.f32.mrf.mxu0 }
  0xe9   :  { %v618_v11 = vmul.f32 %v448_v3, %v448_v3  ;;  %2517 = vmatprep.mubr.f32.mxu1 %v649_v1 }
  0xea   :  { %v452_v12 = vpop.f32.mrf.mxu0  ;;  %1077 = vmatpush1.bf16.msra.mxu1 %v2912_v8 }
  0xeb   :  { %v650_v4 = vadd.f32 %v618_v11, %v586_v10  ;;  %v587_v5 = vmul.f32 %v452_v12, %v452_v12 }
  0xec   :  { %v454_v13 = vpop.f32.mrf.mxu0 }
  0xed   :  { %v619_v14 = vmul.f32 %v454_v13, %v454_v13  ;;  %2518 = vmatmul.mubr.f32.gmra.mxu1 %v650_v4 }
  0xee   :  { %v456_v15 = vpop.f32.mrf.mxu0 }
  0xef   :  { %v651_v16 = vadd.f32 %v619_v14, %v587_v5  ;;  %v588_v18 = vmul.f32 %v456_v15, %v456_v15 }
  0xf0   :  { %v458_v17 = vpop.f32.mrf.mxu0 }
  0xf1   :  { %v620_v6 = vmul.f32 %v458_v17, %v458_v17  ;;  %2520 = vmatprep.mubr.f32.mxu1 %v651_v16 }
  0xf2   :  { %v462_v19 = vpop.f32.mrf.mxu0 }
  0xf3   :  { %v652_v7 = vadd.f32 %v620_v6, %v588_v18  ;;  %v589_v21 = vmul.f32 %v462_v19, %v462_v19 }
  0xf4   :  { %v464_v20 = vpop.f32.mrf.mxu0 }
  0xf5   :  { %v621_v22 = vmul.f32 %v464_v20, %v464_v20  ;;  %2521 = vmatmul.mubr.f32.gmra.mxu1 %v652_v7 }
  0xf6   :  { %v466_v23 = vpop.f32.mrf.mxu0 }
  0xf7   :  { %v653_v24 = vadd.f32 %v621_v22, %v589_v21  ;;  %v590_v25 = vmul.f32 %v466_v23, %v466_v23 }
  0xf8   :  { %v468_v8 = vpop.f32.mrf.mxu0 }
  0xf9   :  { %v622_v26 = vmul.f32 %v468_v8, %v468_v8  ;;  %2523 = vmatprep.mubr.f32.mxu1 %v653_v24 }
  0xfa   :  { %v472_v27 = vpop.f32.mrf.mxu0 }
  0xfb   :  { %v654_v28 = vadd.f32 %v622_v26, %v590_v25  ;;  %v591_v30 = vmul.f32 %v472_v27, %v472_v27 }
  0xfc   :  { %v474_v29 = vpop.f32.mrf.mxu0 }
  0xfd   :  { %v623_v31 = vmul.f32 %v474_v29, %v474_v29  ;;  %2524 = vmatmul.mubr.f32.gmra.mxu1 %v654_v28 }
  0xfe   :  { %v476_v32 = vpop.f32.mrf.mxu0 }
  0xff   :  { %v655_v33 = vadd.f32 %v623_v31, %v591_v30  ;;  %v592_v35 = vmul.f32 %v476_v32, %v476_v32 }
 0x100   :  { %v478_v34 = vpop.f32.mrf.mxu0 }
 0x101   :  { %v624_v36 = vmul.f32 %v478_v34, %v478_v34  ;;  %2526 = vmatprep.mubr.f32.mxu1 %v655_v33 }
 0x102   :  { %v482_v37 = vpop.f32.mrf.mxu0 }
 0x103   :  { %v656_v38 = vadd.f32 %v624_v36, %v592_v35  ;;  %v593_v40 = vmul.f32 %v482_v37, %v482_v37 }
 0x104   :  { %v484_v39 = vpop.f32.mrf.mxu0 }
 0x105   :  { %v625_v41 = vmul.f32 %v484_v39, %v484_v39  ;;  %2527 = vmatmul.mubr.f32.gmra.mxu1 %v656_v38 }
 0x106   :  { %v486_v42 = vpop.f32.mrf.mxu0 }
 0x107   :  { %v657_v43 = vadd.f32 %v625_v41, %v593_v40  ;;  %v594_v45 = vmul.f32 %v486_v42, %v486_v42 }
 0x108   :  { %v488_v44 = vpop.f32.mrf.mxu0 }
 0x109   :  { %v626_v46 = vmul.f32 %v488_v44, %v488_v44  ;;  %2529 = vmatprep.mubr.f32.mxu1 %v657_v43 }
 0x10a   :  { %v492_v47 = vpop.f32.mrf.mxu0 }
 0x10b   :  { %v658_v48 = vadd.f32 %v626_v46, %v594_v45  ;;  %v595_v50 = vmul.f32 %v492_v47, %v492_v47 }
 0x10c   :  { %v494_v49 = vpop.f32.mrf.mxu0 }
 0x10d   :  { %v627_v51 = vmul.f32 %v494_v49, %v494_v49  ;;  %2530 = vmatmul.mubr.f32.gmra.mxu1 %v658_v48 }
 0x10e   :  { %v496_v52 = vpop.f32.mrf.mxu0 }
 0x10f   :  { %v659_v53 = vadd.f32 %v627_v51, %v595_v50  ;;  %v596_v55 = vmul.f32 %v496_v52, %v496_v52 }
 0x110   :  { %v498_v54 = vpop.f32.mrf.mxu0 }
 0x111   :  { %v628_v56 = vmul.f32 %v498_v54, %v498_v54  ;;  %2532 = vmatprep.mubr.f32.mxu1 %v659_v53 }
 0x112   :  { %v502_v57 = vpop.f32.mrf.mxu0 }
 0x113   :  { %v660_v58 = vadd.f32 %v628_v56, %v596_v55  ;;  %v597_v60 = vmul.f32 %v502_v57, %v502_v57 }
 0x114   :  { %v504_v59 = vpop.f32.mrf.mxu0 }
 0x115   :  { %v629_v61 = vmul.f32 %v504_v59, %v504_v59  ;;  %2533 = vmatmul.mubr.f32.gmra.mxu1 %v660_v58 }
 0x116   :  { %v506_v62 = vpop.f32.mrf.mxu0 }
 0x117   :  { %v661_v63 = vadd.f32 %v629_v61, %v597_v60  ;;  %v598_v9 = vmul.f32 %v506_v62, %v506_v62 }
 0x118   :  { %v508_v0 = vpop.f32.mrf.mxu0 }
 0x119   :  { %v630_v1 = vmul.f32 %v508_v0, %v508_v0  ;;  %2535 = vmatprep.mubr.f32.mxu1 %v661_v63 }
 0x11a   :  { %v512_v3 = vpop.f32.mrf.mxu0 }
 0x11b   :  { %v662_v10 = vadd.f32 %v630_v1, %v598_v9  ;;  %v599_v12 = vmul.f32 %v512_v3, %v512_v3 }
 0x11c   :  { %v514_v11 = vpop.f32.mrf.mxu0 }
 0x11d   :  { %v631_v4 = vmul.f32 %v514_v11, %v514_v11  ;;  %2536 = vmatmul.mubr.f32.gmra.mxu1 %v662_v10 }
 0x11e   :  { %v516_v13 = vpop.f32.mrf.mxu0 }
 0x11f   :  { %v663_v5 = vadd.f32 %v631_v4, %v599_v12  ;;  %v600_v15 = vmul.f32 %v516_v13, %v516_v13 }
 0x120   :  { %v518_v14 = vpop.f32.mrf.mxu0 }
 0x121   :  { %v632_v16 = vmul.f32 %v518_v14, %v518_v14  ;;  %2538 = vmatprep.mubr.f32.mxu1 %v663_v5 }
 0x122   :  { %v522_v17 = vpop.f32.mrf.mxu0 }
 0x123   :  { %v664_v18 = vadd.f32 %v632_v16, %v600_v15  ;;  %v601_v19 = vmul.f32 %v522_v17, %v522_v17  ;;  %v2672_v15 = vld [vmem:[%s3327_s1] sm:$0xff]   ;;  %v2673_v16 = vld [vmem:[%s3327_s1 + $0x8] sm:$0xff]   ;;  %v2674_v17 = vld [vmem:[%s3327_s1 + $0x10] sm:$0xff]  }
 0x124   :  { %v524_v6 = vpop.f32.mrf.mxu0 }
 0x125   :  { %v633_v7 = vmul.f32 %v524_v6, %v524_v6  ;;  %2539 = vmatmul.mubr.f32.gmra.mxu1 %v664_v18  ;;  %v2675_v18 = vld [vmem:[%s3327_s1 + $0x18] sm:$0xff]   ;;  %v2676_v6 = vld [vmem:[%s3327_s1 + $0x20] sm:$0xff]  }
 0x126   :  { %v526_v20 = vpop.f32.mrf.mxu0 }
 0x127   :  { %v665_v21 = vadd.f32 %v633_v7, %v601_v19  ;;  %v602_v23 = vmul.f32 %v526_v20, %v526_v20  ;;  %v2677_v19 = vld [vmem:[%s3327_s1 + $0x28] sm:$0xff]   ;;  %v2678_v7 = vld [vmem:[%s3327_s1 + $0x30] sm:$0xff]   ;;  %v2679_v20 = vld [vmem:[%s3327_s1 + $0x38] sm:$0xff]  }
 0x128   :  { %v528_v22 = vpop.f32.mrf.mxu0 }
 0x129   :  { %v634_v24 = vmul.f32 %v528_v22, %v528_v22  ;;  %2541 = vmatprep.mubr.f32.mxu1 %v665_v21  ;;  %v2680_v21 = vld [vmem:[%s3327_s1 + $0x40] sm:$0xff]  }
 0x12a   :  { %v532_v8 = vpop.f32.mrf.mxu0 }
 0x12b   :  { %v666_v25 = vadd.f32 %v634_v24, %v602_v23  ;;  %v603_v27 = vmul.f32 %v532_v8, %v532_v8  ;;  %v2681_v23 = vld [vmem:[%s3327_s1 + $0x48] sm:$0xff]  }
 0x12c   :  { %v534_v26 = vpop.f32.mrf.mxu0 }
 0x12d   :  { %v635_v28 = vmul.f32 %v534_v26, %v534_v26  ;;  %2542 = vmatmul.mubr.f32.gmra.mxu1 %v666_v25 }
 0x12e   :  { %v536_v29 = vpop.f32.mrf.mxu0 }
 0x12f   :  { %v667_v30 = vadd.f32 %v635_v28, %v603_v27  ;;  %v604_v32 = vmul.f32 %v536_v29, %v536_v29  ;;  %v2682_v27 = vld [vmem:[%s3327_s1 + $0x50] sm:$0xff]  }
 0x130   :  { %v538_v31 = vpop.f32.mrf.mxu0 }
 0x131   :  { %v636_v33 = vmul.f32 %v538_v31, %v538_v31  ;;  %2544 = vmatprep.mubr.f32.mxu1 %v667_v30 }
 0x132   :  { %v542_v34 = vpop.f32.mrf.mxu0 }
 0x133   :  { %v668_v35 = vadd.f32 %v636_v33, %v604_v32  ;;  %v605_v37 = vmul.f32 %v542_v34, %v542_v34  ;;  %v2683_v32 = vld [vmem:[%s3327_s1 + $0x58] sm:$0xff]  }
 0x134   :  { %v544_v36 = vpop.f32.mrf.mxu0 }
 0x135   :  { %v637_v38 = vmul.f32 %v544_v36, %v544_v36  ;;  %2545 = vmatmul.mubr.f32.gmra.mxu1 %v668_v35 }
 0x136   :  { %v546_v39 = vpop.f32.mrf.mxu0 }
 0x137   :  { %v669_v40 = vadd.f32 %v637_v38, %v605_v37  ;;  %v606_v42 = vmul.f32 %v546_v39, %v546_v39  ;;  %v2684_v37 = vld [vmem:[%s3327_s1 + $0x60] sm:$0xff]  }
 0x138   :  { %v548_v41 = vpop.f32.mrf.mxu0 }
 0x139   :  { %v638_v43 = vmul.f32 %v548_v41, %v548_v41  ;;  %2547 = vmatprep.mubr.f32.mxu1 %v669_v40 }
 0x13a   :  { %v552_v44 = vpop.f32.mrf.mxu0 }
 0x13b   :  { %v670_v45 = vadd.f32 %v638_v43, %v606_v42  ;;  %v607_v47 = vmul.f32 %v552_v44, %v552_v44  ;;  %v2685_v42 = vld [vmem:[%s3327_s1 + $0x68] sm:$0xff]  }
 0x13c   :  { %v554_v46 = vpop.f32.mrf.mxu0 }
 0x13d   :  { %v639_v48 = vmul.f32 %v554_v46, %v554_v46  ;;  %2548 = vmatmul.mubr.f32.gmra.mxu1 %v670_v45 }
 0x13e   :  { %v556_v49 = vpop.f32.mrf.mxu0 }
 0x13f   :  { %v671_v50 = vadd.f32 %v639_v48, %v607_v47  ;;  %v608_v52 = vmul.f32 %v556_v49, %v556_v49  ;;  %v2686_v47 = vld [vmem:[%s3327_s1 + $0x70] sm:$0xff]  }
 0x140   :  { %v558_v51 = vpop.f32.mrf.mxu0 }
 0x141   :  { %v640_v53 = vmul.f32 %v558_v51, %v558_v51  ;;  %2550 = vmatprep.mubr.f32.mxu1 %v671_v50 }
 0x142   :  { %v562_v54 = vpop.f32.mrf.mxu0 }
 0x143   :  { %v672_v55 = vadd.f32 %v640_v53, %v608_v52  ;;  %v609_v57 = vmul.f32 %v562_v54, %v562_v54  ;;  %v2687_v52 = vld [vmem:[%s3327_s1 + $0x78] sm:$0xff]   ;;  %s2839_s1 = smov [#allocation2]  }
 0x144   :  { %v564_v56 = vpop.f32.mrf.mxu0  ;;  %s2288_s15 = sshll.u32 %s2839_s1, 4  ;;  %s2289_s15 = int_to_ptr.vmem [resolvable:$true] %s2288_s15 }
 0x145   :  { %v641_v58 = vmul.f32 %v564_v56, %v564_v56  ;;  %2551 = vmatmul.mubr.f32.gmra.mxu1 %v672_v55  ;;  %s2816_s16 = scalar_lea.vmem %s2289_s15, 12288  ;;  %p2821_p1 = scmp.lt.s32.totalorder %s2289_s15, %s2289_s15 }
 0x146   :  { %v566_v59 = vpop.f32.mrf.mxu0  ;;  %p2817_p0 = scmp.ne.s32.totalorder %s2289_s15, %s2816_s16  ;;  %p2822_p2 = scmp.lt.s32.totalorder %s2816_s16, %s2816_s16 }
 0x147   :  { %v673_v60 = vadd.f32 %v641_v58, %v609_v57  ;;  %v610_v62 = vmul.f32 %v566_v59, %v566_v59 }
 0x148   :  { %v568_v61 = vpop.f32.mrf.mxu0  ;;  %p2823_p3 = por %p2822_p2, %p2821_p1 }
 0x149   :  { %v642_v63 = vmul.f32 %v568_v61, %v568_v61  ;;  %2553 = vmatprep.mubr.f32.mxu1 %v673_v60 }
 0x14a   :  { %v572_v0 = vpop.f32.mrf.mxu0  ;;  %p2824_p4 = pnand %p2823_p3, %p2817_p0 }
 0x14b   :  { %v674_v9 = vadd.f32 %v642_v63, %v610_v62  ;;  %v611_v3 = vmul.f32 %v572_v0, %v572_v0 }
 0x14c   :  { %v574_v1 = vpop.f32.mrf.mxu0 }
 0x14d   :  { %v643_v10 = vmul.f32 %v574_v1, %v574_v1  ;;  %2554 = vmatmul.mubr.f32.gmra.mxu1 %v674_v9 }
 0x14e   :  { %v576_v11 = vpop.f32.mrf.mxu0 }
 0x14f   :  { %v675_v12 = vadd.f32 %v643_v10, %v611_v3  ;;  %v612_v13 = vmul.f32 %v576_v11, %v576_v11 }
 0x150   :  { %v578_v4 = vpop.f32.mrf.mxu0 }
 0x151   :  { %v644_v5 = vmul.f32 %v578_v4, %v578_v4  ;;  %2556 = vmatprep.mubr.f32.mxu1 %v675_v12 }
 0x153   :  { %v676_v14 = vadd.f32 %v644_v5, %v612_v13 }
 0x155   :  { %2557 = vmatmul.mubr.f32.gmra.mxu1 %v676_v14 }
 0x156   :  { %1094 = vmatprep.mubr.bf16.mxu1 %v2838_v2 }
 0x159   :  { %2367 = vmatmul.mubr.msk.bf16.vlgmr.msra.gmra.mxu1 %vm339_vm0, %v2672_v15 }
 0x15a   :  { %1104 = vmatprep.mubr.bf16.mxu1 %v2838_v2 }
 0x161   :  { %2368 = vmatmul.mubr.msk.bf16.gmra.mxu1 %vm339_vm0, %v2673_v16 }
 0x162   :  { %1114 = vmatprep.mubr.bf16.mxu1 %v2838_v2 }
 0x169   :  { %2369 = vmatmul.mubr.msk.bf16.gmra.mxu1 %vm339_vm0, %v2674_v17 }
 0x16a   :  { %1124 = vmatprep.mubr.bf16.mxu1 %v2838_v2 }
 0x171   :  { %2370 = vmatmul.mubr.msk.bf16.gmra.mxu1 %vm339_vm0, %v2675_v18 }
 0x172   :  { %1134 = vmatprep.mubr.bf16.mxu1 %v2838_v2 }
 0x179   :  { %2371 = vmatmul.mubr.msk.bf16.gmra.mxu1 %vm339_vm0, %v2676_v6 }
 0x17a   :  { %1144 = vmatprep.mubr.bf16.mxu1 %v2838_v2 }
 0x181   :  { %2372 = vmatmul.mubr.msk.bf16.gmra.mxu1 %vm339_vm0, %v2677_v19 }
 0x182   :  { %1154 = vmatprep.mubr.bf16.mxu1 %v2838_v2 }
 0x189   :  { %2373 = vmatmul.mubr.msk.bf16.gmra.mxu1 %vm339_vm0, %v2678_v7 }
 0x18a   :  { %1164 = vmatprep.mubr.bf16.mxu1 %v2838_v2 }
 0x191   :  { %2374 = vmatmul.mubr.msk.bf16.gmra.mxu1 %vm339_vm0, %v2679_v20 }
 0x192   :  { %1174 = vmatprep.mubr.bf16.mxu1 %v2838_v2 }
 0x199   :  { %2375 = vmatmul.mubr.msk.bf16.gmra.mxu1 %vm339_vm0, %v2680_v21 }
 0x19a   :  { %1184 = vmatprep.mubr.bf16.mxu1 %v2838_v2 }
 0x19d   :  { %v3097_v22 = vpop.f32.mrf.mxu1 }
 0x19e   :  { %v1770_v24 = vmul.f32 %v3097_v22, %v3097_v22 }
 0x19f   :  { %v3104_v8 = vpop.f32.mrf.mxu1 }
 0x1a0   :  { %v1769_v25 = vmul.f32 %v3104_v8, %v3104_v8  ;;  %1834 = vst [vmem:[#allocation2 + $0x108] sm:$0xff] %v1770_v24 }
 0x1a1   :  { %2376 = vmatmul.mubr.msk.bf16.gmra.mxu1 %vm339_vm0, %v2681_v23 }
 0x1a2   :  { %1194 = vmatprep.mubr.bf16.mxu1 %v2838_v2  ;;  %1833 = vst [vmem:[#allocation2 + $0x100] sm:$0xff] %v1769_v25 }
 0x1a5   :  { %v3110_v26 = vpop.f32.mrf.mxu1 }
 0x1a6   :  { %v1772_v28 = vmul.f32 %v3110_v26, %v3110_v26 }
 0x1a7   :  { %v3117_v29 = vpop.f32.mrf.mxu1 }
 0x1a8   :  { %v1771_v30 = vmul.f32 %v3117_v29, %v3117_v29  ;;  %1836 = vst [vmem:[#allocation2 + $0x118] sm:$0xff] %v1772_v28 }
 0x1a9   :  { %2377 = vmatmul.mubr.msk.bf16.gmra.mxu1 %vm339_vm0, %v2682_v27 }
 0x1aa   :  { %1204 = vmatprep.mubr.bf16.mxu1 %v2838_v2  ;;  %1835 = vst [vmem:[#allocation2 + $0x110] sm:$0xff] %v1771_v30 }
 0x1ad   :  { %v3123_v31 = vpop.f32.mrf.mxu1 }
 0x1ae   :  { %v1774_v33 = vmul.f32 %v3123_v31, %v3123_v31 }
 0x1af   :  { %v3130_v34 = vpop.f32.mrf.mxu1 }
 0x1b0   :  { %v1773_v35 = vmul.f32 %v3130_v34, %v3130_v34  ;;  %1838 = vst [vmem:[#allocation2 + $0x128] sm:$0xff] %v1774_v33 }
 0x1b1   :  { %2378 = vmatmul.mubr.msk.bf16.gmra.mxu1 %vm339_vm0, %v2683_v32 }
 0x1b2   :  { %1214 = vmatprep.mubr.bf16.mxu1 %v2838_v2  ;;  %1837 = vst [vmem:[#allocation2 + $0x120] sm:$0xff] %v1773_v35 }
 0x1b5   :  { %v3136_v36 = vpop.f32.mrf.mxu1 }
 0x1b6   :  { %v1776_v38 = vmul.f32 %v3136_v36, %v3136_v36 }
 0x1b7   :  { %v3143_v39 = vpop.f32.mrf.mxu1 }
 0x1b8   :  { %v1775_v40 = vmul.f32 %v3143_v39, %v3143_v39  ;;  %1840 = vst [vmem:[#allocation2 + $0x138] sm:$0xff] %v1776_v38 }
 0x1b9   :  { %2379 = vmatmul.mubr.msk.bf16.gmra.mxu1 %vm339_vm0, %v2684_v37 }
 0x1ba   :  { %1224 = vmatprep.mubr.bf16.mxu1 %v2838_v2  ;;  %1839 = vst [vmem:[#allocation2 + $0x130] sm:$0xff] %v1775_v40 }
 0x1bd   :  { %v3149_v41 = vpop.f32.mrf.mxu1 }
 0x1be   :  { %v1778_v43 = vmul.f32 %v3149_v41, %v3149_v41 }
 0x1bf   :  { %v3156_v44 = vpop.f32.mrf.mxu1 }
 0x1c0   :  { %v1777_v45 = vmul.f32 %v3156_v44, %v3156_v44  ;;  %1842 = vst [vmem:[#allocation2 + $0x148] sm:$0xff] %v1778_v43 }
 0x1c1   :  { %2380 = vmatmul.mubr.msk.bf16.gmra.mxu1 %vm339_vm0, %v2685_v42 }
 0x1c2   :  { %1234 = vmatprep.mubr.bf16.mxu1 %v2838_v2  ;;  %1841 = vst [vmem:[#allocation2 + $0x140] sm:$0xff] %v1777_v45 }
 0x1c5   :  { %v3162_v46 = vpop.f32.mrf.mxu1 }
 0x1c6   :  { %v1780_v48 = vmul.f32 %v3162_v46, %v3162_v46 }
 0x1c7   :  { %v3169_v49 = vpop.f32.mrf.mxu1 }
 0x1c8   :  { %v1779_v50 = vmul.f32 %v3169_v49, %v3169_v49  ;;  %1844 = vst [vmem:[#allocation2 + $0x158] sm:$0xff] %v1780_v48 }
 0x1c9   :  { %2381 = vmatmul.mubr.msk.bf16.gmra.mxu1 %vm339_vm0, %v2686_v47 }
 0x1ca   :  { %1244 = vmatprep.mubr.bf16.mxu1 %v2838_v2  ;;  %1843 = vst [vmem:[#allocation2 + $0x150] sm:$0xff] %v1779_v50 }
 0x1cd   :  { %v3175_v51 = vpop.f32.mrf.mxu1 }
 0x1ce   :  { %v1782_v53 = vmul.f32 %v3175_v51, %v3175_v51 }
 0x1cf   :  { %v3182_v54 = vpop.f32.mrf.mxu1 }
 0x1d0   :  { %v1781_v55 = vmul.f32 %v3182_v54, %v3182_v54  ;;  %1846 = vst [vmem:[#allocation2 + $0x168] sm:$0xff] %v1782_v53 }
 0x1d1   :  { %2382 = vmatmul.mubr.msk.bf16.gmra.mxu1 %vm339_vm0, %v2687_v52 }
 0x1d2   :  { %1845 = vst [vmem:[#allocation2 + $0x160] sm:$0xff] %v1781_v55 }
 0x1d5   :  { %v3187_v2 = vpop.f32.mrf.mxu1 }
 0x1d6   :  { %v1784_v56 = vmul.f32 %v3187_v2, %v3187_v2 }
 0x1d7   :  { %v3191_v57 = vpop.f32.mrf.mxu1 }
 0x1d8   :  { %v1783_v58 = vmul.f32 %v3191_v57, %v3191_v57  ;;  %1848 = vst [vmem:[#allocation2 + $0x178] sm:$0xff] %v1784_v56 }
 0x1da   :  { %1847 = vst [vmem:[#allocation2 + $0x170] sm:$0xff] %v1783_v58 }
 0x1dd   :  { %v3195_v59 = vpop.f32.mrf.mxu1 }
 0x1de   :  { %v1786_v60 = vmul.f32 %v3195_v59, %v3195_v59 }
 0x1df   :  { %v3199_v61 = vpop.f32.mrf.mxu1 }
 0x1e0   :  { %v1785_v62 = vmul.f32 %v3199_v61, %v3199_v61  ;;  %1850 = vst [vmem:[#allocation2 + $0x188] sm:$0xff] %v1786_v60 }
 0x1e2   :  { %1849 = vst [vmem:[#allocation2 + $0x180] sm:$0xff] %v1785_v62 }
 0x1e5   :  { %v3203_v63 = vpop.f32.mrf.mxu1 }
 0x1e6   :  { %v1788_v0 = vmul.f32 %v3203_v63, %v3203_v63 }
 0x1e7   :  { %v3207_v9 = vpop.f32.mrf.mxu1 }
 0x1e8   :  { %v1787_v1 = vmul.f32 %v3207_v9, %v3207_v9  ;;  %1852 = vst [vmem:[#allocation2 + $0x198] sm:$0xff] %v1788_v0 }
 0x1ea   :  { %1851 = vst [vmem:[#allocation2 + $0x190] sm:$0xff] %v1787_v1 }
 0x1ed   :  { %v3211_v3 = vpop.f32.mrf.mxu1 }
 0x1ee   :  { %v1790_v10 = vmul.f32 %v3211_v3, %v3211_v3 }
 0x1ef   :  { %v3215_v11 = vpop.f32.mrf.mxu1 }
 0x1f0   :  { %v1789_v12 = vmul.f32 %v3215_v11, %v3215_v11  ;;  %1854 = vst [vmem:[#allocation2 + $0x1a8] sm:$0xff] %v1790_v10 }
 0x1f2   :  { %1853 = vst [vmem:[#allocation2 + $0x1a0] sm:$0xff] %v1789_v12 }
 0x1f5   :  { %v3219_v4 = vpop.f32.mrf.mxu1 }
 0x1f6   :  { %v1792_v13 = vmul.f32 %v3219_v4, %v3219_v4 }
 0x1f7   :  { %v3223_v5 = vpop.f32.mrf.mxu1 }
 0x1f8   :  { %v1791_v14 = vmul.f32 %v3223_v5, %v3223_v5  ;;  %1856 = vst [vmem:[#allocation2 + $0x1b8] sm:$0xff] %v1792_v13 }
 0x1fa   :  { %1855 = vst [vmem:[#allocation2 + $0x1b0] sm:$0xff] %v1791_v14 }
 0x1fd   :  { %v3227_v15 = vpop.f32.mrf.mxu1 }
 0x1fe   :  { %v1794_v16 = vmul.f32 %v3227_v15, %v3227_v15 }
 0x1ff   :  { %v3231_v17 = vpop.f32.mrf.mxu1 }
 0x200   :  { %v1793_v18 = vmul.f32 %v3231_v17, %v3231_v17  ;;  %1858 = vst [vmem:[#allocation2 + $0x1c8] sm:$0xff] %v1794_v16 }
 0x202   :  { %1857 = vst [vmem:[#allocation2 + $0x1c0] sm:$0xff] %v1793_v18 }
 0x205   :  { %v3235_v6 = vpop.f32.mrf.mxu1 }
 0x206   :  { %v1796_v19 = vmul.f32 %v3235_v6, %v3235_v6 }
 0x207   :  { %v3239_v7 = vpop.f32.mrf.mxu1 }
 0x208   :  { %v1795_v20 = vmul.f32 %v3239_v7, %v3239_v7  ;;  %1860 = vst [vmem:[#allocation2 + $0x1d8] sm:$0xff] %v1796_v19 }
 0x20a   :  { %1859 = vst [vmem:[#allocation2 + $0x1d0] sm:$0xff] %v1795_v20 }
 0x20d   :  { %v3243_v21 = vpop.f32.mrf.mxu1 }
 0x20e   :  { %v1798_v23 = vmul.f32 %v3243_v21, %v3243_v21 }
 0x20f   :  { %v3247_v24 = vpop.f32.mrf.mxu1 }
 0x210   :  { %v1797_v25 = vmul.f32 %v3247_v24, %v3247_v24  ;;  %1862 = vst [vmem:[#allocation2 + $0x1e8] sm:$0xff] %v1798_v23 }
 0x212   :  { %1861 = vst [vmem:[#allocation2 + $0x1e0] sm:$0xff] %v1797_v25 }
 0x215   :  { %v3251_v27 = vpop.f32.mrf.mxu1 }
 0x216   :  { %v1800_v28 = vmul.f32 %v3251_v27, %v3251_v27 }
 0x217   :  { %v3255_v30 = vpop.f32.mrf.mxu1 }
 0x218   :  { %v1799_v32 = vmul.f32 %v3255_v30, %v3255_v30  ;;  %1864 = vst [vmem:[#allocation2 + $0x1f8] sm:$0xff] %v1800_v28 }
 0x219   :  { %v1096_v33 = vpop.f32.mrf.mxu1 }
 0x21a   :  { %1863 = vst [vmem:[#allocation2 + $0x1f0] sm:$0xff] %v1799_v32  ;;  %v1255_v37 = vmul.f32 %v1096_v33, %v1096_v33 }
 0x21b   :  { %v1098_v35 = vpop.f32.mrf.mxu1 }
 0x21c   :  { %v1287_v38 = vmul.f32 %v1098_v35, %v1098_v35 }
 0x21d   :  { %v1100_v40 = vpop.f32.mrf.mxu1 }
 0x21e   :  { %v1319_v42 = vadd.f32 %v1287_v38, %v1255_v37  ;;  %v1256_v45 = vmul.f32 %v1100_v40, %v1100_v40 }
 0x21f   :  { %v1102_v43 = vpop.f32.mrf.mxu1 }
 0x220   :  { %v1288_v47 = vmul.f32 %v1102_v43, %v1102_v43  ;;  %2591 = vmatprep.mubr.f32.mxu0 %v1319_v42 }
 0x221   :  { %v1106_v48 = vpop.f32.mrf.mxu1 }
 0x222   :  { %v1320_v50 = vadd.f32 %v1288_v47, %v1256_v45  ;;  %v1257_v53 = vmul.f32 %v1106_v48, %v1106_v48 }
 0x223   :  { %v1108_v52 = vpop.f32.mrf.mxu1 }
 0x224   :  { %v1289_v55 = vmul.f32 %v1108_v52, %v1108_v52  ;;  %2592 = vmatmul.mubr.f32.vlgmr.msra.gmra.mxu0 %v1320_v50 }
 0x225   :  { %v1110_v56 = vpop.f32.mrf.mxu1 }
 0x226   :  { %v1321_v58 = vadd.f32 %v1289_v55, %v1257_v53  ;;  %v1258_v62 = vmul.f32 %v1110_v56, %v1110_v56 }
 0x227   :  { %v1112_v60 = vpop.f32.mrf.mxu1 }
 0x228   :  { %v1290_v0 = vmul.f32 %v1112_v60, %v1112_v60  ;;  %2594 = vmatprep.mubr.f32.mxu0 %v1321_v58 }
 0x229   :  { %v1116_v1 = vpop.f32.mrf.mxu1 }
 0x22a   :  { %v1322_v10 = vadd.f32 %v1290_v0, %v1258_v62  ;;  %v1259_v13 = vmul.f32 %v1116_v1, %v1116_v1 }
 0x22b   :  { %v1118_v12 = vpop.f32.mrf.mxu1 }
 0x22c   :  { %v1291_v14 = vmul.f32 %v1118_v12, %v1118_v12  ;;  %2595 = vmatmul.mubr.f32.gmra.mxu0 %v1322_v10 }
 0x22d   :  { %v1120_v16 = vpop.f32.mrf.mxu1 }
 0x22e   :  { %v1323_v18 = vadd.f32 %v1291_v14, %v1259_v13  ;;  %v1260_v20 = vmul.f32 %v1120_v16, %v1120_v16 }
 0x22f   :  { %v1122_v19 = vpop.f32.mrf.mxu1 }
 0x230   :  { %v1292_v23 = vmul.f32 %v1122_v19, %v1122_v19  ;;  %2597 = vmatprep.mubr.f32.mxu0 %v1323_v18 }
 0x231   :  { %v1126_v25 = vpop.f32.mrf.mxu1 }
 0x232   :  { %v1324_v28 = vadd.f32 %v1292_v23, %v1260_v20  ;;  %v1261_v33 = vmul.f32 %v1126_v25, %v1126_v25 }
 0x233   :  { %v1128_v32 = vpop.f32.mrf.mxu1 }
 0x234   :  { %v1293_v35 = vmul.f32 %v1128_v32, %v1128_v32  ;;  %2598 = vmatmul.mubr.f32.gmra.mxu0 %v1324_v28 }
 0x235   :  { %v1130_v37 = vpop.f32.mrf.mxu1 }
 0x236   :  { %v1325_v38 = vadd.f32 %v1293_v35, %v1261_v33  ;;  %v1262_v42 = vmul.f32 %v1130_v37, %v1130_v37 }
 0x237   :  { %v1132_v40 = vpop.f32.mrf.mxu1 }
 0x238   :  { %v1294_v43 = vmul.f32 %v1132_v40, %v1132_v40  ;;  %2600 = vmatprep.mubr.f32.mxu0 %v1325_v38 }
 0x239   :  { %v1136_v45 = vpop.f32.mrf.mxu1 }
 0x23a   :  { %v1326_v47 = vadd.f32 %v1294_v43, %v1262_v42  ;;  %v1263_v50 = vmul.f32 %v1136_v45, %v1136_v45 }
 0x23b   :  { %v1138_v48 = vpop.f32.mrf.mxu1 }
 0x23c   :  { %v1295_v52 = vmul.f32 %v1138_v48, %v1138_v48  ;;  %2601 = vmatmul.mubr.f32.gmra.mxu0 %v1326_v47 }
 0x23d   :  { %v1140_v53 = vpop.f32.mrf.mxu1 }
 0x23e   :  { %v1327_v55 = vadd.f32 %v1295_v52, %v1263_v50  ;;  %v1264_v58 = vmul.f32 %v1140_v53, %v1140_v53 }
 0x23f   :  { %v1142_v56 = vpop.f32.mrf.mxu1 }
 0x240   :  { %v1296_v60 = vmul.f32 %v1142_v56, %v1142_v56  ;;  %2603 = vmatprep.mubr.f32.mxu0 %v1327_v55 }
 0x241   :  { %v1146_v62 = vpop.f32.mrf.mxu1 }
 0x242   :  { %v1328_v0 = vadd.f32 %v1296_v60, %v1264_v58  ;;  %v1265_v10 = vmul.f32 %v1146_v62, %v1146_v62 }
 0x243   :  { %v1148_v1 = vpop.f32.mrf.mxu1 }
 0x244   :  { %v1297_v12 = vmul.f32 %v1148_v1, %v1148_v1  ;;  %2604 = vmatmul.mubr.f32.gmra.mxu0 %v1328_v0 }
 0x245   :  { %v1150_v13 = vpop.f32.mrf.mxu1 }
 0x246   :  { %v1329_v14 = vadd.f32 %v1297_v12, %v1265_v10  ;;  %v1266_v18 = vmul.f32 %v1150_v13, %v1150_v13 }
 0x247   :  { %v1152_v16 = vpop.f32.mrf.mxu1 }
 0x248   :  { %v1298_v19 = vmul.f32 %v1152_v16, %v1152_v16  ;;  %2606 = vmatprep.mubr.f32.mxu0 %v1329_v14 }
 0x249   :  { %v1156_v20 = vpop.f32.mrf.mxu1 }
 0x24a   :  { %v1330_v23 = vadd.f32 %v1298_v19, %v1266_v18  ;;  %v1267_v28 = vmul.f32 %v1156_v20, %v1156_v20 }
 0x24b   :  { %v1158_v25 = vpop.f32.mrf.mxu1 }
 0x24c   :  { %v1299_v32 = vmul.f32 %v1158_v25, %v1158_v25  ;;  %2607 = vmatmul.mubr.f32.gmra.mxu0 %v1330_v23 }
 0x24d   :  { %v1160_v33 = vpop.f32.mrf.mxu1 }
 0x24e   :  { %v1331_v35 = vadd.f32 %v1299_v32, %v1267_v28  ;;  %v1268_v38 = vmul.f32 %v1160_v33, %v1160_v33 }
 0x24f   :  { %v1162_v37 = vpop.f32.mrf.mxu1 }
 0x250   :  { %v1300_v40 = vmul.f32 %v1162_v37, %v1162_v37  ;;  %2609 = vmatprep.mubr.f32.mxu0 %v1331_v35 }
 0x251   :  { %v1166_v42 = vpop.f32.mrf.mxu1 }
 0x252   :  { %v1332_v43 = vadd.f32 %v1300_v40, %v1268_v38  ;;  %v1269_v47 = vmul.f32 %v1166_v42, %v1166_v42 }
 0x253   :  { %v1168_v45 = vpop.f32.mrf.mxu1 }
 0x254   :  { %v1301_v48 = vmul.f32 %v1168_v45, %v1168_v45  ;;  %2610 = vmatmul.mubr.f32.gmra.mxu0 %v1332_v43 }
 0x255   :  { %v1170_v50 = vpop.f32.mrf.mxu1 }
 0x256   :  { %v1333_v52 = vadd.f32 %v1301_v48, %v1269_v47  ;;  %v1270_v55 = vmul.f32 %v1170_v50, %v1170_v50 }
 0x257   :  { %v1172_v53 = vpop.f32.mrf.mxu1 }
 0x258   :  { %v1302_v56 = vmul.f32 %v1172_v53, %v1172_v53  ;;  %2612 = vmatprep.mubr.f32.mxu0 %v1333_v52 }
 0x259   :  { %v1176_v58 = vpop.f32.mrf.mxu1 }
 0x25a   :  { %v1334_v60 = vadd.f32 %v1302_v56, %v1270_v55  ;;  %v1271_v0 = vmul.f32 %v1176_v58, %v1176_v58 }
 0x25b   :  { %v1178_v62 = vpop.f32.mrf.mxu1 }
 0x25c   :  { %v1303_v1 = vmul.f32 %v1178_v62, %v1178_v62  ;;  %2613 = vmatmul.mubr.f32.gmra.mxu0 %v1334_v60 }
 0x25d   :  { %v1180_v10 = vpop.f32.mrf.mxu1 }
 0x25e   :  { %v1335_v12 = vadd.f32 %v1303_v1, %v1271_v0  ;;  %v1272_v14 = vmul.f32 %v1180_v10, %v1180_v10 }
 0x25f   :  { %v1182_v13 = vpop.f32.mrf.mxu1 }
 0x260   :  { %v1304_v16 = vmul.f32 %v1182_v13, %v1182_v13  ;;  %2615 = vmatprep.mubr.f32.mxu0 %v1335_v12 }
 0x261   :  { %v1186_v18 = vpop.f32.mrf.mxu1 }
 0x262   :  { %v1336_v19 = vadd.f32 %v1304_v16, %v1272_v14  ;;  %v1273_v23 = vmul.f32 %v1186_v18, %v1186_v18 }
 0x263   :  { %v1188_v20 = vpop.f32.mrf.mxu1 }
 0x264   :  { %v1305_v25 = vmul.f32 %v1188_v20, %v1188_v20  ;;  %2616 = vmatmul.mubr.f32.gmra.mxu0 %v1336_v19 }
 0x265   :  { %v1190_v28 = vpop.f32.mrf.mxu1 }
 0x266   :  { %v1337_v32 = vadd.f32 %v1305_v25, %v1273_v23  ;;  %v1274_v35 = vmul.f32 %v1190_v28, %v1190_v28 }
 0x267   :  { %v1192_v33 = vpop.f32.mrf.mxu1 }
 0x268   :  { %v1306_v37 = vmul.f32 %v1192_v33, %v1192_v33  ;;  %2618 = vmatprep.mubr.f32.mxu0 %v1337_v32 }
 0x269   :  { %v1196_v38 = vpop.f32.mrf.mxu1 }
 0x26a   :  { %v1338_v40 = vadd.f32 %v1306_v37, %v1274_v35  ;;  %v1275_v43 = vmul.f32 %v1196_v38, %v1196_v38 }
 0x26b   :  { %v1198_v42 = vpop.f32.mrf.mxu1 }
 0x26c   :  { %v1307_v45 = vmul.f32 %v1198_v42, %v1198_v42  ;;  %2619 = vmatmul.mubr.f32.gmra.mxu0 %v1338_v40 }
 0x26d   :  { %v1200_v47 = vpop.f32.mrf.mxu1 }
 0x26e   :  { %v1339_v48 = vadd.f32 %v1307_v45, %v1275_v43  ;;  %v1276_v52 = vmul.f32 %v1200_v47, %v1200_v47 }
 0x26f   :  { %v1202_v50 = vpop.f32.mrf.mxu1 }
 0x270   :  { %v1308_v53 = vmul.f32 %v1202_v50, %v1202_v50  ;;  %2621 = vmatprep.mubr.f32.mxu0 %v1339_v48 }
 0x271   :  { %v1206_v55 = vpop.f32.mrf.mxu1 }
 0x272   :  { %v1340_v56 = vadd.f32 %v1308_v53, %v1276_v52  ;;  %v1277_v60 = vmul.f32 %v1206_v55, %v1206_v55 }
 0x273   :  { %v1208_v58 = vpop.f32.mrf.mxu1 }
 0x274   :  { %v1309_v62 = vmul.f32 %v1208_v58, %v1208_v58  ;;  %2622 = vmatmul.mubr.f32.gmra.mxu0 %v1340_v56 }
 0x275   :  { %v1210_v0 = vpop.f32.mrf.mxu1 }
 0x276   :  { %v1341_v1 = vadd.f32 %v1309_v62, %v1277_v60  ;;  %v1278_v12 = vmul.f32 %v1210_v0, %v1210_v0 }
 0x277   :  { %v1212_v10 = vpop.f32.mrf.mxu1 }
 0x278   :  { %v1310_v13 = vmul.f32 %v1212_v10, %v1212_v10  ;;  %2624 = vmatprep.mubr.f32.mxu0 %v1341_v1 }
 0x279   :  { %v1216_v14 = vpop.f32.mrf.mxu1 }
 0x27a   :  { %v1342_v16 = vadd.f32 %v1310_v13, %v1278_v12  ;;  %v1279_v19 = vmul.f32 %v1216_v14, %v1216_v14 }
 0x27b   :  { %v1218_v18 = vpop.f32.mrf.mxu1 }
 0x27c   :  { %v1311_v20 = vmul.f32 %v1218_v18, %v1218_v18  ;;  %2625 = vmatmul.mubr.f32.gmra.mxu0 %v1342_v16 }
 0x27d   :  { %v1220_v23 = vpop.f32.mrf.mxu1 }
 0x27e   :  { %v1343_v25 = vadd.f32 %v1311_v20, %v1279_v19  ;;  %v1280_v32 = vmul.f32 %v1220_v23, %v1220_v23 }
 0x27f   :  { %v1222_v28 = vpop.f32.mrf.mxu1 }
 0x280   :  { %v1312_v33 = vmul.f32 %v1222_v28, %v1222_v28  ;;  %2627 = vmatprep.mubr.f32.mxu0 %v1343_v25 }
 0x281   :  { %v1226_v35 = vpop.f32.mrf.mxu1 }
 0x282   :  { %v1344_v37 = vadd.f32 %v1312_v33, %v1280_v32  ;;  %v1281_v40 = vmul.f32 %v1226_v35, %v1226_v35  ;;  %v1899_v33 = vadd.f32 1e-07, %v3097_v22  ;;  %v1898_v35 = vadd.f32 1e-07, %v3104_v8 }
 0x283   :  { %v1228_v38 = vpop.f32.mrf.mxu1 }
 0x284   :  { %v1313_v42 = vmul.f32 %v1228_v38, %v1228_v38  ;;  %2628 = vmatmul.mubr.f32.gmra.mxu0 %v1344_v37  ;;  %2688 = vlog2.f32 %v1899_v33  ;;  %v1901_v37 = vadd.f32 1e-07, %v3110_v26 }
 0x285   :  { %v1230_v43 = vpop.f32.mrf.mxu1  ;;  %2690 = vlog2.f32 %v1898_v35 }
 0x286   :  { %v1345_v45 = vadd.f32 %v1313_v42, %v1281_v40  ;;  %v1282_v48 = vmul.f32 %v1230_v43, %v1230_v43  ;;  %v1900_v43 = vadd.f32 1e-07, %v3117_v29 }
 0x287   :  { %v1232_v47 = vpop.f32.mrf.mxu1 }
 0x288   :  { %v1314_v50 = vmul.f32 %v1232_v47, %v1232_v47  ;;  %2630 = vmatprep.mubr.f32.mxu0 %v1345_v45 }
 0x289   :  { %v1236_v52 = vpop.f32.mrf.mxu1 }
 0x28a   :  { %v1346_v53 = vadd.f32 %v1314_v50, %v1282_v48  ;;  %v1283_v56 = vmul.f32 %v1236_v52, %v1236_v52 }
 0x28b   :  { %v1238_v55 = vpop.f32.mrf.mxu1 }
 0x28c   :  { %v1315_v58 = vmul.f32 %v1238_v55, %v1238_v55  ;;  %2631 = vmatmul.mubr.f32.gmra.mxu0 %v1346_v53  ;;  %v1903_v53 = vadd.f32 1e-07, %v3123_v31 }
 0x28d   :  { %v1240_v60 = vpop.f32.mrf.mxu1 }
 0x28e   :  { %v1347_v62 = vadd.f32 %v1315_v58, %v1283_v56  ;;  %v1284_v1 = vmul.f32 %v1240_v60, %v1240_v60 }
 0x28f   :  { %v1242_v0 = vpop.f32.mrf.mxu1 }
 0x290   :  { %v1316_v10 = vmul.f32 %v1242_v0, %v1242_v0  ;;  %2633 = vmatprep.mubr.f32.mxu0 %v1347_v62 }
 0x291   :  { %v1246_v12 = vpop.f32.mrf.mxu1  ;;  %v2689_v60 = vpop.eup %2688 }
 0x292   :  { %v1348_v13 = vadd.f32 %v1316_v10, %v1284_v1  ;;  %v1285_v16 = vmul.f32 %v1246_v12, %v1246_v12  ;;  %v2691_v1 = vpop.eup %2690  ;;  %v1902_v10 = vadd.f32 1e-07, %v3130_v34 }
 0x293   :  { %v1248_v14 = vpop.f32.mrf.mxu1 }
 0x294   :  { %v1317_v18 = vmul.f32 %v1248_v14, %v1248_v14  ;;  %2634 = vmatmul.mubr.f32.gmra.mxu0 %v1348_v13  ;;  %v1933_v13 = vmul.f32 0.6931472, %v2689_v60  ;;  %v1905_v14 = vadd.f32 1e-07, %v3136_v36 }
 0x295   :  { %v1250_v19 = vpop.f32.mrf.mxu1 }
 0x296   :  { %v1349_v20 = vadd.f32 %v1317_v18, %v1285_v16  ;;  %v1286_v25 = vmul.f32 %v1250_v19, %v1250_v19 }
 0x297   :  { %v1252_v23 = vpop.f32.mrf.mxu1 }
 0x298   :  { %v1318_v28 = vmul.f32 %v1252_v23, %v1252_v23  ;;  %2636 = vmatprep.mubr.f32.mxu0 %v1349_v20 }
 0x29a   :  { %v1350_v32 = vadd.f32 %v1318_v28, %v1286_v25  ;;  %v1996_v28 = vmul.f32 1.442695, %v1933_v13 }
 0x29c   :  { %2637 = vmatmul.mubr.f32.gmra.mxu0 %v1350_v32  ;;  %v1904_v32 = vadd.f32 1e-07, %v3143_v39 }
 0x2e4   :  { %v2593_v38 = vpop.f32.mrf.mxu0 }
 0x2e5   :  { %v1577_v40 = vsub.f32 %v3097_v22, %v2593_v38  ;;  %v2028_v42 = vadd.f32 1e-07, %v2593_v38 }
 0x2e6   :  { %v1417_v45 = vpop.f32.mrf.mxu0 }
 0x2e7   :  { %v1641_v47 = vmul.f32 %v1577_v40, %v1577_v40  ;;  %2692 = vlog2.f32 %v2028_v42  ;;  %v1576_v48 = vsub.f32 %v3104_v8, %v1417_v45  ;;  %v2027_v50 = vadd.f32 1e-07, %v1417_v45 }
 0x2e8   :  { %2694 = vlog2.f32 %v1901_v37  ;;  %v1907_v42 = vadd.f32 1e-07, %v3149_v41 }
 0x2e9   :  { %v1640_v52 = vmul.f32 %v1576_v48, %v1576_v48  ;;  %2696 = vlog2.f32 %v2027_v50  ;;  %1705 = vst [vmem:[#allocation2 + $0x8] sm:$0xff] %v1641_v47 }
 0x2ea   :  { %2698 = vlog2.f32 %v1900_v43 }
 0x2eb   :  { %1704 = vst [vmem:[#allocation2] sm:$0xff] %v1640_v52 }
 0x2ec   :  { %v2596_v55 = vpop.f32.mrf.mxu0 }
 0x2ed   :  { %v1579_v22 = vsub.f32 %v3110_v26, %v2596_v55  ;;  %v2030_v56 = vadd.f32 1e-07, %v2596_v55  ;;  %v1931_v26 = vmul.f32 0.6931472, %v2691_v1 }
 0x2ee   :  { %v1427_v58 = vpop.f32.mrf.mxu0 }
 0x2ef   :  { %v1643_v62 = vmul.f32 %v1579_v22, %v1579_v22  ;;  %2700 = vlog2.f32 %v2030_v56  ;;  %v1578_v0 = vsub.f32 %v3117_v29, %v1427_v58  ;;  %v2029_v8 = vadd.f32 1e-07, %v1427_v58 }
 0x2f0   :  { %2702 = vlog2.f32 %v1903_v53  ;;  %v1995_v47 = vmul.f32 1.442695, %v1931_v26  ;;  %v1906_v58 = vadd.f32 1e-07, %v3156_v44 }
 0x2f1   :  { %v1642_v12 = vmul.f32 %v1578_v0, %v1578_v0  ;;  %2704 = vlog2.f32 %v2029_v8  ;;  %1707 = vst [vmem:[#allocation2 + $0x18] sm:$0xff] %v1643_v62 }
 0x2f2   :  { %2706 = vlog2.f32 %v1902_v10 }
 0x2f3   :  { %1706 = vst [vmem:[#allocation2 + $0x10] sm:$0xff] %v1642_v12  ;;  %2708 = vlog2.f32 %v1905_v14 }
 0x2f4   :  { %v2693_v16 = vpop.eup %2692  ;;  %v2599_v18 = vpop.f32.mrf.mxu0 }
 0x2f5   :  { %v2695_v19 = vpop.eup %2694  ;;  %v2062_v20 = vmul.f32 0.6931472, %v2693_v16  ;;  %v1581_v29 = vsub.f32 %v3123_v31, %v2599_v18  ;;  %v2032_v23 = vadd.f32 1e-07, %v2599_v18 }
 0x2f6   :  { %v2697_v25 = vpop.eup %2696  ;;  %v1437_v33 = vpop.f32.mrf.mxu0  ;;  %v1937_v50 = vmul.f32 0.6931472, %v2695_v19 }
 0x2f7   :  { %v2699_v35 = vpop.eup %2698  ;;  %v2124_v37 = vmul.f32 1.442695, %v2062_v20  ;;  %v2060_v38 = vmul.f32 0.6931472, %v2697_v25  ;;  %v1645_v40 = vmul.f32 %v1581_v29, %v1581_v29  ;;  %2710 = vlog2.f32 %v2032_v23 }
 0x2f8   :  { %v1580_v43 = vsub.f32 %v3130_v34, %v1437_v33  ;;  %v2031_v45 = vadd.f32 1e-07, %v1437_v33  ;;  %v1935_v52 = vmul.f32 0.6931472, %v2699_v35  ;;  %v1998_v10 = vmul.f32 1.442695, %v1937_v50 }
 0x2f9   :  { %v2156_v48 = vsub.f32 %v1996_v28, %v2124_v37  ;;  %v2123_v31 = vmul.f32 1.442695, %v2060_v38  ;;  %1709 = vst [vmem:[#allocation2 + $0x28] sm:$0xff] %v1645_v40  ;;  %v1909_v28 = vadd.f32 1e-07, %v3162_v46 }
 0x2fa   :  { %v1644_v53 = vmul.f32 %v1580_v43, %v1580_v43  ;;  %2712 = vlog2.f32 %v2031_v45  ;;  %v1997_v12 = vmul.f32 1.442695, %v1935_v52 }
 0x2fb   :  { %2714 = vlog2.f32 %v1904_v32  ;;  %v2188_v55 = vand.u32 2147483647, %v2156_v48  ;;  %v2155_v22 = vsub.f32 %v1995_v47, %v2123_v31 }
 0x2fc   :  { %v2701_v56 = vpop.eup %2700  ;;  %2716 = vlog2.f32 %v1907_v42  ;;  %v2602_v60 = vpop.f32.mrf.mxu0  ;;  %1708 = vst [vmem:[#allocation2 + $0x20] sm:$0xff] %v1644_v53 }
 0x2fd   :  { %v2703_v62 = vpop.eup %2702  ;;  %v2187_v0 = vand.u32 2147483647, %v2155_v22  ;;  %v2066_v34 = vmul.f32 0.6931472, %v2701_v56  ;;  %v1583_v8 = vsub.f32 %v3136_v36, %v2602_v60  ;;  %v2034_v13 = vadd.f32 1e-07, %v2602_v60 }
 0x2fe   :  { %v2705_v1 = vpop.eup %2704  ;;  %v1447_v14 = vpop.f32.mrf.mxu0  ;;  %2252 = vst [vmem:[#allocation2 + $0x208] sm:$0xff] %v2188_v55  ;;  %v1941_v19 = vmul.f32 0.6931472, %v2703_v62 }
 0x2ff   :  { %v2126_v16 = vmul.f32 1.442695, %v2066_v34  ;;  %v2064_v26 = vmul.f32 0.6931472, %v2705_v1  ;;  %v1647_v18 = vmul.f32 %v1583_v8, %v1583_v8  ;;  %2718 = vlog2.f32 %v2034_v13  ;;  %2251 = vst [vmem:[#allocation2 + $0x200] sm:$0xff] %v2187_v0  ;;  %v2707_v36 = vpop.eup %2706 }
 0x300   :  { %v1582_v20 = vsub.f32 %v3143_v39, %v1447_v14  ;;  %v2033_v29 = vadd.f32 1e-07, %v1447_v14  ;;  %2720 = vlog2.f32 %v1906_v58  ;;  %v2709_v33 = vpop.eup %2708  ;;  %v2000_v40 = vmul.f32 1.442695, %v1941_v19 }
 0x301   :  { %v2158_v23 = vsub.f32 %v1998_v10, %v2126_v16  ;;  %v2125_v25 = vmul.f32 1.442695, %v2064_v26  ;;  %1711 = vst [vmem:[#allocation2 + $0x38] sm:$0xff] %v1647_v18  ;;  %v1939_v47 = vmul.f32 0.6931472, %v2707_v36 }
 0x302   :  { %v1646_v32 = vmul.f32 %v1582_v20, %v1582_v20  ;;  %2722 = vlog2.f32 %v2033_v29  ;;  %v1945_v48 = vmul.f32 0.6931472, %v2709_v33  ;;  %v1908_v58 = vadd.f32 1e-07, %v3169_v49 }
 0x303   :  { %v2190_v35 = vand.u32 2147483647, %v2158_v23  ;;  %v2157_v37 = vsub.f32 %v1997_v12, %v2125_v25  ;;  %2724 = vlog2.f32 %v1909_v28  ;;  %v1999_v8 = vmul.f32 1.442695, %v1939_v47 }
 0x304   :  { %v2711_v38 = vpop.eup %2710  ;;  %v2605_v42 = vpop.f32.mrf.mxu0  ;;  %1710 = vst [vmem:[#allocation2 + $0x30] sm:$0xff] %v1646_v32  ;;  %v2002_v12 = vmul.f32 1.442695, %v1945_v48  ;;  %v1911_v29 = vadd.f32 1e-07, %v3175_v51 }
 0x305   :  { %v2189_v43 = vand.u32 2147483647, %v2157_v37  ;;  %v2070_v45 = vmul.f32 0.6931472, %v2711_v38  ;;  %v1585_v39 = vsub.f32 %v3149_v41, %v2605_v42  ;;  %v2036_v31 = vadd.f32 1e-07, %v2605_v42 }
 0x306   :  { %v1457_v50 = vpop.f32.mrf.mxu0  ;;  %2254 = vst [vmem:[#allocation2 + $0x218] sm:$0xff] %v2190_v35  ;;  %v1910_v37 = vadd.f32 1e-07, %v3182_v54 }
 0x307   :  { %v2713_v52 = vpop.eup %2712  ;;  %v2128_v53 = vmul.f32 1.442695, %v2070_v45  ;;  %v1649_v55 = vmul.f32 %v1585_v39, %v1585_v39  ;;  %v1584_v22 = vsub.f32 %v3156_v44, %v1457_v50  ;;  %2726 = vlog2.f32 %v2036_v31  ;;  %2253 = vst [vmem:[#allocation2 + $0x210] sm:$0xff] %v2189_v43 }
 0x308   :  { %v2715_v56 = vpop.eup %2714  ;;  %v2068_v60 = vmul.f32 0.6931472, %v2713_v52  ;;  %v2035_v62 = vadd.f32 1e-07, %v1457_v50 }
 0x309   :  { %v2717_v0 = vpop.eup %2716  ;;  %v2160_v41 = vsub.f32 %v2000_v40, %v2128_v53  ;;  %v1648_v34 = vmul.f32 %v1584_v22, %v1584_v22  ;;  %1713 = vst [vmem:[#allocation2 + $0x48] sm:$0xff] %v1649_v55  ;;  %v1943_v13 = vmul.f32 0.6931472, %v2715_v56  ;;  %v1913_v56 = vadd.f32 1e-07, %v3187_v2 }
 0x30a   :  { %v2127_v1 = vmul.f32 1.442695, %v2068_v60  ;;  %2728 = vlog2.f32 %v2035_v62  ;;  %v1949_v26 = vmul.f32 0.6931472, %v2717_v0 }
 0x30b   :  { %v2192_v10 = vand.u32 2147483647, %v2160_v41  ;;  %2730 = vlog2.f32 %v1908_v58  ;;  %1712 = vst [vmem:[#allocation2 + $0x40] sm:$0xff] %v1648_v34  ;;  %v2001_v43 = vmul.f32 1.442695, %v1943_v13 }
 0x30c   :  { %v2159_v14 = vsub.f32 %v1999_v8, %v2127_v1  ;;  %v2608_v44 = vpop.f32.mrf.mxu0  ;;  %v2719_v16 = vpop.eup %2718  ;;  %v2004_v52 = vmul.f32 1.442695, %v1949_v26 }
 0x30d   :  { %v1587_v18 = vsub.f32 %v3162_v46, %v2608_v44  ;;  %v2038_v19 = vadd.f32 1e-07, %v2608_v44  ;;  %v2721_v20 = vpop.eup %2720  ;;  %v2074_v25 = vmul.f32 0.6931472, %v2719_v16  ;;  %2256 = vst [vmem:[#allocation2 + $0x228] sm:$0xff] %v2192_v10 }
 0x30e   :  { %v2191_v23 = vand.u32 2147483647, %v2159_v14  ;;  %v1467_v36 = vpop.f32.mrf.mxu0  ;;  %v1947_v42 = vmul.f32 0.6931472, %v2721_v20  ;;  %v1912_v14 = vadd.f32 1e-07, %v3191_v57 }
 0x30f   :  { %v2723_v28 = vpop.eup %2722  ;;  %v1651_v32 = vmul.f32 %v1587_v18, %v1587_v18  ;;  %2732 = vlog2.f32 %v2038_v19  ;;  %v1586_v33 = vsub.f32 %v3169_v49, %v1467_v36  ;;  %v2037_v35 = vadd.f32 1e-07, %v1467_v36 }
 0x310   :  { %v2130_v38 = vmul.f32 1.442695, %v2074_v25  ;;  %v2072_v40 = vmul.f32 0.6931472, %v2723_v28  ;;  %2255 = vst [vmem:[#allocation2 + $0x220] sm:$0xff] %v2191_v23  ;;  %v2725_v47 = vpop.eup %2724 }
 0x311   :  { %v1650_v46 = vmul.f32 %v1586_v33, %v1586_v33  ;;  %2734 = vlog2.f32 %v2037_v35  ;;  %1715 = vst [vmem:[#allocation2 + $0x58] sm:$0xff] %v1651_v32  ;;  %v2003_v53 = vmul.f32 1.442695, %v1947_v42  ;;  %v1953_v1 = vmul.f32 0.6931472, %v2725_v47 }
 0x312   :  { %2736 = vlog2.f32 %v1911_v29  ;;  %v2162_v45 = vsub.f32 %v2002_v12, %v2130_v38  ;;  %v2129_v39 = vmul.f32 1.442695, %v2072_v40  ;;  %v1915_v44 = vadd.f32 1e-07, %v3195_v59 }
 0x313   :  { %2738 = vlog2.f32 %v1910_v37  ;;  %1714 = vst [vmem:[#allocation2 + $0x50] sm:$0xff] %v1650_v46  ;;  %v2006_v32 = vmul.f32 1.442695, %v1953_v1  ;;  %v1914_v46 = vadd.f32 1e-07, %v3199_v61 }
 0x314   :  { %v2194_v48 = vand.u32 2147483647, %v2162_v45  ;;  %v2161_v31 = vsub.f32 %v2001_v43, %v2129_v39  ;;  %v2611_v50 = vpop.f32.mrf.mxu0  ;;  %v2727_v49 = vpop.eup %2726 }
 0x315   :  { %v1589_v55 = vsub.f32 %v3175_v51, %v2611_v50  ;;  %v2040_v22 = vadd.f32 1e-07, %v2611_v50  ;;  %v2078_v60 = vmul.f32 0.6931472, %v2727_v49 }
 0x316   :  { %v2193_v58 = vand.u32 2147483647, %v2161_v31  ;;  %v1477_v62 = vpop.f32.mrf.mxu0  ;;  %2258 = vst [vmem:[#allocation2 + $0x238] sm:$0xff] %v2194_v48 }
 0x317   :  { %v2729_v0 = vpop.eup %2728  ;;  %v1653_v41 = vmul.f32 %v1589_v55, %v1589_v55  ;;  %2740 = vlog2.f32 %v2040_v22  ;;  %v1588_v34 = vsub.f32 %v3182_v54, %v1477_v62  ;;  %v2039_v8 = vadd.f32 1e-07, %v1477_v62 }
 0x318   :  { %v2132_v10 = vmul.f32 1.442695, %v2078_v60  ;;  %v2076_v12 = vmul.f32 0.6931472, %v2729_v0  ;;  %v2731_v13 = vpop.eup %2730  ;;  %2257 = vst [vmem:[#allocation2 + $0x230] sm:$0xff] %v2193_v58 }
 0x319   :  { %v1652_v51 = vmul.f32 %v1588_v34, %v1588_v34  ;;  %2742 = vlog2.f32 %v2039_v8  ;;  %1717 = vst [vmem:[#allocation2 + $0x68] sm:$0xff] %v1653_v41  ;;  %v1951_v19 = vmul.f32 0.6931472, %v2731_v13  ;;  %v1917_v0 = vadd.f32 1e-07, %v3203_v63 }
 0x31a   :  { %2744 = vlog2.f32 %v1913_v56  ;;  %v2164_v16 = vsub.f32 %v2004_v52, %v2132_v10  ;;  %v2131_v26 = vmul.f32 1.442695, %v2076_v12  ;;  %v1916_v13 = vadd.f32 1e-07, %v3207_v9 }
 0x31b   :  { %2746 = vlog2.f32 %v1912_v14  ;;  %1716 = vst [vmem:[#allocation2 + $0x60] sm:$0xff] %v1652_v51  ;;  %v2005_v47 = vmul.f32 1.442695, %v1951_v19  ;;  %v1919_v19 = vadd.f32 1e-07, %v3211_v3 }
 0x31c   :  { %v2733_v18 = vpop.eup %2732  ;;  %v2196_v54 = vand.u32 2147483647, %v2164_v16  ;;  %v2163_v20 = vsub.f32 %v2003_v53, %v2131_v26  ;;  %v2614_v29 = vpop.f32.mrf.mxu0  ;;  %2748 = vlog2.f32 %v1915_v44 }
 0x31d   :  { %v2082_v23 = vmul.f32 0.6931472, %v2733_v18  ;;  %v1591_v25 = vsub.f32 %v3187_v2, %v2614_v29  ;;  %v2042_v36 = vadd.f32 1e-07, %v2614_v29 }
 0x31e   :  { %v2735_v28 = vpop.eup %2734  ;;  %v2195_v33 = vand.u32 2147483647, %v2163_v20  ;;  %v1487_v35 = vpop.f32.mrf.mxu0  ;;  %2260 = vst [vmem:[#allocation2 + $0x248] sm:$0xff] %v2196_v54 }
 0x31f   :  { %v2737_v37 = vpop.eup %2736  ;;  %v2134_v38 = vmul.f32 1.442695, %v2082_v23  ;;  %v2080_v40 = vmul.f32 0.6931472, %v2735_v28  ;;  %v1655_v42 = vmul.f32 %v1591_v25, %v1591_v25  ;;  %2750 = vlog2.f32 %v2042_v36 }
 0x320   :  { %v1590_v43 = vsub.f32 %v3191_v57, %v1487_v35  ;;  %v2041_v45 = vadd.f32 1e-07, %v1487_v35  ;;  %v2739_v39 = vpop.eup %2738  ;;  %v1957_v31 = vmul.f32 0.6931472, %v2737_v37  ;;  %2259 = vst [vmem:[#allocation2 + $0x240] sm:$0xff] %v2195_v33 }
 0x321   :  { %v2166_v2 = vsub.f32 %v2006_v32, %v2134_v38  ;;  %v2133_v48 = vmul.f32 1.442695, %v2080_v40  ;;  %1719 = vst [vmem:[#allocation2 + $0x78] sm:$0xff] %v1655_v42  ;;  %v1955_v55 = vmul.f32 0.6931472, %v2739_v39 }
 0x322   :  { %v1654_v50 = vmul.f32 %v1590_v43, %v1590_v43  ;;  %2752 = vlog2.f32 %v2041_v45  ;;  %v2008_v62 = vmul.f32 1.442695, %v1957_v31 }
 0x323   :  { %v2198_v49 = vand.u32 2147483647, %v2166_v2  ;;  %v2165_v52 = vsub.f32 %v2005_v47, %v2133_v48  ;;  %2754 = vlog2.f32 %v1914_v46  ;;  %v2007_v44 = vmul.f32 1.442695, %v1955_v55 }
 0x324   :  { %v2741_v53 = vpop.eup %2740  ;;  %v2617_v22 = vpop.f32.mrf.mxu0  ;;  %1718 = vst [vmem:[#allocation2 + $0x70] sm:$0xff] %v1654_v50  ;;  %v1918_v48 = vadd.f32 1e-07, %v3215_v11 }
 0x325   :  { %v2197_v56 = vand.u32 2147483647, %v2165_v52  ;;  %v2086_v58 = vmul.f32 0.6931472, %v2741_v53  ;;  %v1593_v57 = vsub.f32 %v3195_v59, %v2617_v22  ;;  %v2044_v41 = vadd.f32 1e-07, %v2617_v22 }
 0x326   :  { %v2743_v60 = vpop.eup %2742  ;;  %v1497_v34 = vpop.f32.mrf.mxu0  ;;  %2262 = vst [vmem:[#allocation2 + $0x258] sm:$0xff] %v2198_v49 }
 0x327   :  { %v2745_v8 = vpop.eup %2744  ;;  %v2136_v1 = vmul.f32 1.442695, %v2086_v58  ;;  %v2084_v10 = vmul.f32 0.6931472, %v2743_v60  ;;  %v1657_v12 = vmul.f32 %v1593_v57, %v1593_v57  ;;  %2756 = vlog2.f32 %v2044_v41  ;;  %2261 = vst [vmem:[#allocation2 + $0x250] sm:$0xff] %v2197_v56 }
 0x328   :  { %v1592_v14 = vsub.f32 %v3199_v61, %v1497_v34  ;;  %v2043_v51 = vadd.f32 1e-07, %v1497_v34  ;;  %v2747_v26 = vpop.eup %2746  ;;  %v1961_v18 = vmul.f32 0.6931472, %v2745_v8  ;;  %v1921_v60 = vadd.f32 1e-07, %v3219_v4 }
 0x329   :  { %v2168_v59 = vsub.f32 %v2008_v62, %v2136_v1  ;;  %v2135_v16 = vmul.f32 1.442695, %v2084_v10  ;;  %v2749_v20 = vpop.eup %2748  ;;  %1721 = vst [vmem:[#allocation2 + $0x88] sm:$0xff] %v1657_v12  ;;  %v1959_v35 = vmul.f32 0.6931472, %v2747_v26 }
 0x32a   :  { %v1656_v54 = vmul.f32 %v1592_v14, %v1592_v14  ;;  %2758 = vlog2.f32 %v2043_v51  ;;  %v2010_v33 = vmul.f32 1.442695, %v1961_v18  ;;  %v1965_v45 = vmul.f32 0.6931472, %v2749_v20 }
 0x32b   :  { %2760 = vlog2.f32 %v1917_v0  ;;  %v2200_v29 = vand.u32 2147483647, %v2168_v59  ;;  %v2167_v23 = vsub.f32 %v2007_v44, %v2135_v16  ;;  %v2009_v50 = vmul.f32 1.442695, %v1959_v35 }
 0x32c   :  { %v2751_v25 = vpop.eup %2750  ;;  %2762 = vlog2.f32 %v1916_v13  ;;  %v2620_v36 = vpop.f32.mrf.mxu0  ;;  %1720 = vst [vmem:[#allocation2 + $0x80] sm:$0xff] %v1656_v54  ;;  %v2012_v53 = vmul.f32 1.442695, %v1965_v45  ;;  %v1920_v13 = vadd.f32 1e-07, %v3223_v5 }
 0x32d   :  { %v2199_v61 = vand.u32 2147483647, %v2167_v23  ;;  %v2090_v28 = vmul.f32 0.6931472, %v2751_v25  ;;  %v1595_v32 = vsub.f32 %v3203_v63, %v2620_v36  ;;  %2764 = vlog2.f32 %v1919_v19  ;;  %2264 = vst [vmem:[#allocation2 + $0x268] sm:$0xff] %v2200_v29 }
 0x32e   :  { %v2046_v37 = vadd.f32 1e-07, %v2620_v36  ;;  %v1507_v38 = vpop.f32.mrf.mxu0  ;;  %v1923_v16 = vadd.f32 1e-07, %v3227_v15 }
 0x32f   :  { %v2753_v40 = vpop.eup %2752  ;;  %v2138_v42 = vmul.f32 1.442695, %v2090_v28  ;;  %v1659_v46 = vmul.f32 %v1595_v32, %v1595_v32  ;;  %v1594_v43 = vsub.f32 %v3207_v9, %v1507_v38  ;;  %v2045_v47 = vadd.f32 1e-07, %v1507_v38  ;;  %2263 = vst [vmem:[#allocation2 + $0x260] sm:$0xff] %v2199_v61 }
 0x330   :  { %v2088_v39 = vmul.f32 0.6931472, %v2753_v40  ;;  %2766 = vlog2.f32 %v2046_v37  ;;  %v2755_v2 = vpop.eup %2754 }
 0x331   :  { %v2170_v63 = vsub.f32 %v2010_v33, %v2138_v42  ;;  %v1658_v31 = vmul.f32 %v1594_v43, %v1594_v43  ;;  %2768 = vlog2.f32 %v2045_v47  ;;  %1723 = vst [vmem:[#allocation2 + $0x98] sm:$0xff] %v1659_v46  ;;  %v1963_v55 = vmul.f32 0.6931472, %v2755_v2 }
 0x332   :  { %v2137_v49 = vmul.f32 1.442695, %v2088_v39  ;;  %2770 = vlog2.f32 %v1918_v48  ;;  %v1922_v2 = vadd.f32 1e-07, %v3231_v17 }
 0x333   :  { %v2202_v52 = vand.u32 2147483647, %v2170_v63  ;;  %1722 = vst [vmem:[#allocation2 + $0x90] sm:$0xff] %v1658_v31 }
 0x334   :  { %v2169_v22 = vsub.f32 %v2009_v50, %v2137_v49  ;;  %v2623_v56 = vpop.f32.mrf.mxu0  ;;  %v2757_v9 = vpop.eup %2756 }
 0x335   :  { %v1597_v58 = vsub.f32 %v3211_v3, %v2623_v56  ;;  %v2048_v57 = vadd.f32 1e-07, %v2623_v56  ;;  %v2094_v0 = vmul.f32 0.6931472, %v2757_v9  ;;  %2266 = vst [vmem:[#allocation2 + $0x278] sm:$0xff] %v2202_v52 }
 0x336   :  { %v2201_v62 = vand.u32 2147483647, %v2169_v22  ;;  %v1517_v41 = vpop.f32.mrf.mxu0  ;;  %v2011_v3 = vmul.f32 1.442695, %v1963_v55 }
 0x337   :  { %v2759_v34 = vpop.eup %2758  ;;  %v1661_v8 = vmul.f32 %v1597_v58, %v1597_v58  ;;  %2772 = vlog2.f32 %v2048_v57  ;;  %v1596_v1 = vsub.f32 %v3215_v11, %v1517_v41  ;;  %v2047_v10 = vadd.f32 1e-07, %v1517_v41 }
 0x338   :  { %v2761_v12 = vpop.eup %2760  ;;  %v2140_v14 = vmul.f32 1.442695, %v2094_v0  ;;  %v2092_v51 = vmul.f32 0.6931472, %v2759_v34  ;;  %2265 = vst [vmem:[#allocation2 + $0x270] sm:$0xff] %v2201_v62 }
 0x339   :  { %v2763_v44 = vpop.eup %2762  ;;  %v1660_v59 = vmul.f32 %v1596_v1, %v1596_v1  ;;  %2774 = vlog2.f32 %v2047_v10  ;;  %1725 = vst [vmem:[#allocation2 + $0xa8] sm:$0xff] %v1661_v8  ;;  %v1969_v54 = vmul.f32 0.6931472, %v2761_v12  ;;  %v1925_v34 = vadd.f32 1e-07, %v3235_v6 }
 0x33a   :  { %2776 = vlog2.f32 %v1921_v60  ;;  %v2172_v26 = vsub.f32 %v2012_v53, %v2140_v14  ;;  %v2139_v18 = vmul.f32 1.442695, %v2092_v51  ;;  %v2765_v19 = vpop.eup %2764  ;;  %v1967_v25 = vmul.f32 0.6931472, %v2763_v44 }
 0x33b   :  { %2778 = vlog2.f32 %v1920_v13  ;;  %1724 = vst [vmem:[#allocation2 + $0xa0] sm:$0xff] %v1660_v59  ;;  %v2014_v42 = vmul.f32 1.442695, %v1969_v54  ;;  %v1924_v51 = vadd.f32 1e-07, %v3239_v7 }
 0x33c   :  { %v2204_v11 = vand.u32 2147483647, %v2172_v26  ;;  %v2171_v20 = vsub.f32 %v2011_v3, %v2139_v18  ;;  %v2626_v29 = vpop.f32.mrf.mxu0  ;;  %2780 = vlog2.f32 %v1923_v16  ;;  %v2013_v45 = vmul.f32 1.442695, %v1967_v25 }
 0x33d   :  { %v2767_v23 = vpop.eup %2766  ;;  %v1599_v36 = vsub.f32 %v3219_v4, %v2626_v29  ;;  %v2050_v61 = vadd.f32 1e-07, %v2626_v29  ;;  %v1973_v4 = vmul.f32 0.6931472, %v2765_v19 }
 0x33e   :  { %v2203_v28 = vand.u32 2147483647, %v2171_v20  ;;  %v2098_v32 = vmul.f32 0.6931472, %v2767_v23  ;;  %v1527_v33 = vpop.f32.mrf.mxu0  ;;  %v2769_v35 = vpop.eup %2768  ;;  %2268 = vst [vmem:[#allocation2 + $0x288] sm:$0xff] %v2204_v11 }
 0x33f   :  { %v1663_v37 = vmul.f32 %v1599_v36, %v1599_v36  ;;  %2782 = vlog2.f32 %v2050_v61  ;;  %v1598_v38 = vsub.f32 %v3223_v5, %v1527_v33  ;;  %v2049_v40 = vadd.f32 1e-07, %v1527_v33  ;;  %v2771_v47 = vpop.eup %2770 }
 0x340   :  { %v2142_v46 = vmul.f32 1.442695, %v2098_v32  ;;  %v2096_v43 = vmul.f32 0.6931472, %v2769_v35  ;;  %2267 = vst [vmem:[#allocation2 + $0x280] sm:$0xff] %v2203_v28 }
 0x341   :  { %v1662_v39 = vmul.f32 %v1598_v38, %v1598_v38  ;;  %2784 = vlog2.f32 %v2049_v40  ;;  %1727 = vst [vmem:[#allocation2 + $0xb8] sm:$0xff] %v1663_v37  ;;  %v1971_v52 = vmul.f32 0.6931472, %v2771_v47  ;;  %v2016_v9 = vmul.f32 1.442695, %v1973_v4 }
 0x342   :  { %v2174_v48 = vsub.f32 %v2014_v42, %v2142_v46  ;;  %v2141_v63 = vmul.f32 1.442695, %v2096_v43  ;;  %2786 = vlog2.f32 %v1922_v2  ;;  %v1927_v33 = vadd.f32 1e-07, %v3243_v21 }
 0x343   :  { %1726 = vst [vmem:[#allocation2 + $0xb0] sm:$0xff] %v1662_v39  ;;  %v2015_v12 = vmul.f32 1.442695, %v1971_v52  ;;  %v1926_v42 = vadd.f32 1e-07, %v3247_v24 }
 0x344   :  { %v2773_v31 = vpop.eup %2772  ;;  %v2206_v50 = vand.u32 2147483647, %v2174_v48  ;;  %v2173_v49 = vsub.f32 %v2013_v45, %v2141_v63  ;;  %v2629_v5 = vpop.f32.mrf.mxu0 }
 0x345   :  { %v2102_v53 = vmul.f32 0.6931472, %v2773_v31  ;;  %v1601_v55 = vsub.f32 %v3227_v15, %v2629_v5  ;;  %v2052_v22 = vadd.f32 1e-07, %v2629_v5 }
 0x346   :  { %v2775_v56 = vpop.eup %2774  ;;  %v2205_v58 = vand.u32 2147483647, %v2173_v49  ;;  %v1537_v57 = vpop.f32.mrf.mxu0  ;;  %2270 = vst [vmem:[#allocation2 + $0x298] sm:$0xff] %v2206_v50  ;;  %v1929_v50 = vadd.f32 1e-07, %v3251_v27 }
 0x347   :  { %v2777_v60 = vpop.eup %2776  ;;  %v2144_v62 = vmul.f32 1.442695, %v2102_v53  ;;  %v2100_v0 = vmul.f32 0.6931472, %v2775_v56  ;;  %v1665_v41 = vmul.f32 %v1601_v55, %v1601_v55  ;;  %2788 = vlog2.f32 %v2052_v22 }
 0x348   :  { %v1600_v8 = vsub.f32 %v3231_v17, %v1537_v57  ;;  %v2051_v1 = vadd.f32 1e-07, %v1537_v57  ;;  %v2779_v10 = vpop.eup %2778  ;;  %v1977_v14 = vmul.f32 0.6931472, %v2777_v60  ;;  %2269 = vst [vmem:[#allocation2 + $0x290] sm:$0xff] %v2205_v58 }
 0x349   :  { %v2176_v15 = vsub.f32 %v2016_v9, %v2144_v62  ;;  %v2143_v13 = vmul.f32 1.442695, %v2100_v0  ;;  %v2781_v3 = vpop.eup %2780  ;;  %1729 = vst [vmem:[#allocation2 + $0xc8] sm:$0xff] %v1665_v41  ;;  %v1975_v18 = vmul.f32 0.6931472, %v2779_v10 }
 0x34a   :  { %v1664_v44 = vmul.f32 %v1600_v8, %v1600_v8  ;;  %2790 = vlog2.f32 %v2051_v1  ;;  %v2018_v29 = vmul.f32 1.442695, %v1977_v14  ;;  %v1981_v23 = vmul.f32 0.6931472, %v2781_v3 }
 0x34b   :  { %v2208_v59 = vand.u32 2147483647, %v2176_v15  ;;  %v2175_v16 = vsub.f32 %v2015_v12, %v2143_v13  ;;  %2792 = vlog2.f32 %v1925_v34  ;;  %v2017_v38 = vmul.f32 1.442695, %v1975_v18 }
 0x34c   :  { %v2783_v26 = vpop.eup %2782  ;;  %v2632_v19 = vpop.f32.mrf.mxu0  ;;  %2794 = vlog2.f32 %v1924_v51  ;;  %1728 = vst [vmem:[#allocation2 + $0xc0] sm:$0xff] %v1664_v44  ;;  %v2020_v4 = vmul.f32 1.442695, %v1981_v23  ;;  %v1928_v57 = vadd.f32 1e-07, %v3255_v30 }
 0x34d   :  { %v2207_v17 = vand.u32 2147483647, %v2175_v16  ;;  %v2106_v54 = vmul.f32 0.6931472, %v2783_v26  ;;  %v1603_v11 = vsub.f32 %v3235_v6, %v2632_v19  ;;  %v2054_v25 = vadd.f32 1e-07, %v2632_v19 }
 0x34e   :  { %v2785_v20 = vpop.eup %2784  ;;  %v1547_v36 = vpop.f32.mrf.mxu0  ;;  %2272 = vst [vmem:[#allocation2 + $0x2a8] sm:$0xff] %v2208_v59 }
 0x34f   :  { %v2146_v61 = vmul.f32 1.442695, %v2106_v54  ;;  %v2104_v28 = vmul.f32 0.6931472, %v2785_v20  ;;  %v1667_v32 = vmul.f32 %v1603_v11, %v1603_v11  ;;  %2796 = vlog2.f32 %v2054_v25  ;;  %2271 = vst [vmem:[#allocation2 + $0x2a0] sm:$0xff] %v2207_v17  ;;  %v2787_v43 = vpop.eup %2786 }
 0x350   :  { %v1602_v35 = vsub.f32 %v3239_v7, %v1547_v36  ;;  %v2053_v37 = vadd.f32 1e-07, %v1547_v36  ;;  %v1979_v31 = vmul.f32 0.6931472, %v2787_v43 }
 0x351   :  { %v2178_v6 = vsub.f32 %v2018_v29, %v2146_v61  ;;  %v2145_v40 = vmul.f32 1.442695, %v2104_v28  ;;  %1731 = vst [vmem:[#allocation2 + $0xd8] sm:$0xff] %v1667_v32 }
 0x352   :  { %v1666_v46 = vmul.f32 %v1602_v35, %v1602_v35  ;;  %2798 = vlog2.f32 %v2053_v37  ;;  %v2019_v62 = vmul.f32 1.442695, %v1979_v31 }
 0x353   :  { %v2210_v45 = vand.u32 2147483647, %v2178_v6  ;;  %v2177_v39 = vsub.f32 %v2017_v38, %v2145_v40  ;;  %2800 = vlog2.f32 %v1927_v33 }
 0x354   :  { %v2789_v47 = vpop.eup %2788  ;;  %v2635_v2 = vpop.f32.mrf.mxu0  ;;  %2802 = vlog2.f32 %v1926_v42  ;;  %1730 = vst [vmem:[#allocation2 + $0xd0] sm:$0xff] %v1666_v46 }
 0x355   :  { %v2209_v48 = vand.u32 2147483647, %v2177_v39  ;;  %v2110_v63 = vmul.f32 0.6931472, %v2789_v47  ;;  %v1605_v7 = vsub.f32 %v3243_v21, %v2635_v2  ;;  %v2056_v49 = vadd.f32 1e-07, %v2635_v2 }
 0x356   :  { %v1557_v5 = vpop.f32.mrf.mxu0  ;;  %2274 = vst [vmem:[#allocation2 + $0x2b8] sm:$0xff] %v2210_v45 }
 0x357   :  { %v2791_v52 = vpop.eup %2790  ;;  %v2148_v53 = vmul.f32 1.442695, %v2110_v63  ;;  %v1669_v55 = vmul.f32 %v1605_v7, %v1605_v7  ;;  %v1604_v22 = vsub.f32 %v3247_v24, %v1557_v5  ;;  %2804 = vlog2.f32 %v2056_v49  ;;  %2273 = vst [vmem:[#allocation2 + $0x2b0] sm:$0xff] %v2209_v48 }
 0x358   :  { %v2108_v56 = vmul.f32 0.6931472, %v2791_v52  ;;  %v2055_v9 = vadd.f32 1e-07, %v1557_v5  ;;  %v2793_v58 = vpop.eup %2792 }
 0x359   :  { %v2180_v21 = vsub.f32 %v2020_v4, %v2148_v53  ;;  %v1668_v60 = vmul.f32 %v1604_v22, %v1604_v22  ;;  %v2795_v41 = vpop.eup %2794  ;;  %1733 = vst [vmem:[#allocation2 + $0xe8] sm:$0xff] %v1669_v55  ;;  %v1985_v8 = vmul.f32 0.6931472, %v2793_v58 }
 0x35a   :  { %v2147_v0 = vmul.f32 1.442695, %v2108_v56  ;;  %2806 = vlog2.f32 %v2055_v9  ;;  %v1983_v13 = vmul.f32 0.6931472, %v2795_v41 }
 0x35b   :  { %2808 = vlog2.f32 %v1929_v50  ;;  %v2212_v34 = vand.u32 2147483647, %v2180_v21  ;;  %1732 = vst [vmem:[#allocation2 + $0xe0] sm:$0xff] %v1668_v60  ;;  %v2022_v18 = vmul.f32 1.442695, %v1985_v8 }
 0x35c   :  { %v2179_v1 = vsub.f32 %v2019_v62, %v2147_v0  ;;  %v2638_v10 = vpop.f32.mrf.mxu0  ;;  %v2797_v24 = vpop.eup %2796  ;;  %2810 = vlog2.f32 %v1928_v57  ;;  %v2021_v20 = vmul.f32 1.442695, %v1983_v13 }
 0x35d   :  { %v1607_v12 = vsub.f32 %v3251_v27, %v2638_v10  ;;  %v2058_v15 = vadd.f32 1e-07, %v2638_v10  ;;  %v2114_v51 = vmul.f32 0.6931472, %v2797_v24  ;;  %2276 = vst [vmem:[#allocation2 + $0x2c8] sm:$0xff] %v2212_v34 }
 0x35e   :  { %v2211_v14 = vand.u32 2147483647, %v2179_v1  ;;  %v1567_v44 = vpop.f32.mrf.mxu0 }
 0x35f   :  { %v2799_v3 = vpop.eup %2798  ;;  %v1671_v59 = vmul.f32 %v1607_v12, %v1607_v12  ;;  %2812 = vlog2.f32 %v2058_v15  ;;  %v1606_v16 = vsub.f32 %v3255_v30, %v1567_v44  ;;  %v2057_v26 = vadd.f32 1e-07, %v1567_v44 }
 0x360   :  { %v2150_v19 = vmul.f32 1.442695, %v2114_v51  ;;  %v2112_v17 = vmul.f32 0.6931472, %v2799_v3  ;;  %v2801_v54 = vpop.eup %2800  ;;  %2275 = vst [vmem:[#allocation2 + $0x2c0] sm:$0xff] %v2211_v14 }
 0x361   :  { %v1670_v11 = vmul.f32 %v1606_v16, %v1606_v16  ;;  %2814 = vlog2.f32 %v2057_v26  ;;  %v2803_v23 = vpop.eup %2802  ;;  %1735 = vst [vmem:[#allocation2 + $0xf8] sm:$0xff] %v1671_v59  ;;  %v1989_v25 = vmul.f32 0.6931472, %v2801_v54 }
 0x362   :  { %v2182_v27 = vsub.f32 %v2022_v18, %v2150_v19  ;;  %v2149_v29 = vmul.f32 1.442695, %v2112_v17  ;;  %v1987_v32 = vmul.f32 0.6931472, %v2803_v23 }
 0x363   :  { %1734 = vst [vmem:[#allocation2 + $0xf0] sm:$0xff] %v1670_v11  ;;  %v2024_v38 = vmul.f32 1.442695, %v1989_v25 }
 0x364   :  { %v2214_v36 = vand.u32 2147483647, %v2182_v27  ;;  %v2181_v61 = vsub.f32 %v2021_v20, %v2149_v29  ;;  %v2805_v28 = vpop.eup %2804  ;;  %v2023_v46 = vmul.f32 1.442695, %v1987_v32 }
 0x365   :  { %v2118_v33 = vmul.f32 0.6931472, %v2805_v28 }
 0x366   :  { %v2213_v30 = vand.u32 2147483647, %v2181_v61  ;;  %2278 = vst [vmem:[#allocation2 + $0x2d8] sm:$0xff] %v2214_v36 }
 0x367   :  { %v2807_v35 = vpop.eup %2806  ;;  %v2152_v6 = vmul.f32 1.442695, %v2118_v33 }
 0x368   :  { %v2809_v37 = vpop.eup %2808  ;;  %v2116_v40 = vmul.f32 0.6931472, %v2807_v35  ;;  %2277 = vst [vmem:[#allocation2 + $0x2d0] sm:$0xff] %v2213_v30 }
 0x369   :  { %v2811_v42 = vpop.eup %2810  ;;  %v2184_v43 = vsub.f32 %v2024_v38, %v2152_v6  ;;  %v1993_v39 = vmul.f32 0.6931472, %v2809_v37 }
 0x36a   :  { %v2151_v45 = vmul.f32 1.442695, %v2116_v40  ;;  %v1991_v48 = vmul.f32 0.6931472, %v2811_v42 }
 0x36b   :  { %v2216_v4 = vand.u32 2147483647, %v2184_v43  ;;  %v2026_v50 = vmul.f32 1.442695, %v1993_v39 }
 0x36c   :  { %v2813_v47 = vpop.eup %2812  ;;  %v2183_v2 = vsub.f32 %v2023_v46, %v2151_v45  ;;  %v2025_v52 = vmul.f32 1.442695, %v1991_v48 }
 0x36d   :  { %v2122_v63 = vmul.f32 0.6931472, %v2813_v47  ;;  %2280 = vst [vmem:[#allocation2 + $0x2e8] sm:$0xff] %v2216_v4 }
 0x36e   :  { %v2815_v7 = vpop.eup %2814  ;;  %v2215_v31 = vand.u32 2147483647, %v2183_v2 }
 0x36f   :  { %v2154_v49 = vmul.f32 1.442695, %v2122_v63  ;;  %v2120_v5 = vmul.f32 0.6931472, %v2815_v7 }
 0x370   :  { %2279 = vst [vmem:[#allocation2 + $0x2e0] sm:$0xff] %v2215_v31 }
 0x371   :  { %v2186_v53 = vsub.f32 %v2026_v50, %v2154_v49  ;;  %v2153_v55 = vmul.f32 1.442695, %v2120_v5 }
 0x373   :  { %v2218_v22 = vand.u32 2147483647, %v2186_v53  ;;  %v2185_v56 = vsub.f32 %v2025_v52, %v2153_v55 }
 0x375   :  { %v2217_v9 = vand.u32 2147483647, %v2185_v56  ;;  %2282 = vst [vmem:[#allocation2 + $0x2f8] sm:$0xff] %v2218_v22 }
 0x377   :  { %2281 = vst [vmem:[#allocation2 + $0x2f0] sm:$0xff] %v2217_v9 }
 0x378   :  { %2827 = shalt.err (!%p2824_p4)
}
 0x379   :  { %s2840_s17 = smov 128   ;;  %s2841_s18 = smov 8  }
 0x37a   :  { %2294 = dma.vmem_to_hbm [thread:$0]  %s2289_s15, 12288, %s3330_s4, [#allocation3], %s2840_s17, %s2840_s17, %s2841_s18  }
 0x37b   :  { %2836 = dma.done.wait [#allocation3], 12288  }
 0x37c   :  { %2837 = vsyncadd [#allocation3], 4294955008 }
 0x37d   :  { %2298 = vsyncpa [#allocation3], 1 }

</bundles_post_ra>
